<compile_context>
chip_gen: v6e
topology: v6e:2x2x1
jax: 0.10.0
libtpu: 0.0.40
codegen_flags: <defaults>
</compile_context>

<pallas_src>
import functools
import math

import jax
import jax.numpy as jnp
from jax.experimental import pallas as pl
from jax.experimental.pallas import tpu as pltpu

EPS = 1e-5


def _round_up(x, m):
    return (x + m - 1) // m * m


# ------------------------------ Pallas kernels ------------------------------ #

def conv3x3_stats_kernel(x_ref, w_ref, y_ref, stats_ref, *, th, width, cin):
    """Fused im2col + 3x3 conv for one (image, row-strip) + BN partial sums.

    x_ref:  (1, Ht+2, W+2, cin) zero-padded image, VMEM-resident per image.
    w_ref:  (9, cin, Cp)        3x3 taps flattened along the leading axis.
    y_ref:  (th*W, Cp)          raw conv output rows for this strip (f32).
    stats_ref: (1, 8, Cp)       rows 0/1 = per-channel sum / sum-of-squares.
    """
    h = pl.program_id(1)
    row0 = h * th
    cp = y_ref.shape[-1]
    acc = jnp.zeros((th * width, cp), jnp.float32)
    for ky in range(3):
        for kx in range(3):
            patch = x_ref[0, pl.ds(row0 + ky, th), pl.ds(kx, width), :]
            patch = patch.reshape(th * width, cin)
            acc = acc + jnp.dot(patch, w_ref[ky * 3 + kx],
                                preferred_element_type=jnp.float32)
    y_ref[...] = acc
    s = jnp.sum(acc, axis=0, keepdims=True)           # (1, Cp) channel sum
    ss = jnp.sum(acc * acc, axis=0, keepdims=True)    # (1, Cp) channel sum-sq
    pad = jnp.zeros((6, cp), jnp.float32)
    stats_ref[...] = jnp.concatenate([s, ss, pad], axis=0)[None]


def bn_relu_kernel(y_ref, scale_ref, shift_ref, o_ref):
    """y * scale + shift, then ReLU (scale/shift fold gamma/beta/mean/var)."""
    o_ref[...] = jnp.maximum(y_ref[...] * scale_ref[...] + shift_ref[...], 0.0)


# --------------------------------- wrappers --------------------------------- #

def _choose_strip_rows(H, W, target_rows):
    # Pass-1 output block is (th*W, Cp); th*W must be a multiple of 8 sublanes.
    mult = 8 // math.gcd(W, 8)
    th = max(1, target_rows // max(1, W))
    th = max(mult, (th // mult) * mult)
    return min(th, _round_up(H, mult))


def _choose_rows2(total_rows, unit, cp, budget=8 * 1024 * 1024):
    # Pass-2 block rows: a multiple of `unit` dividing total_rows, sized so the
    # (aliased, double-buffered) f32 in+out blocks stay under `budget`.
    per_row = 4 * cp * 4
    cap_units = max(1, (budget // per_row) // unit)
    m_units = total_rows // unit
    best = 1
    for d in range(1, m_units + 1):
        if m_units % d == 0 and d <= cap_units:
            best = d
    return best * unit


def _conv_bn_relu_block(x_nhwc, w_hwio, gamma, beta, *, tile_rows, mxu_dtype):
    N, H, W, Cin = x_nhwc.shape
    C = w_hwio.shape[-1]
    Cin_p = _round_up(Cin, 8)          # full-sublane MXU contraction operand
    Cp = _round_up(C, 128)             # lane-dense (unmasked) output stores

    th = _choose_strip_rows(H, W, tile_rows)
    H_t = _round_up(H, th)
    nh = H_t // th
    rows = th * W
    nt = N * nh
    Pp = nt * rows
    P = N * H * W

    # Zero-padded NHWC image: +1 halo top, +1+(H_t-H) bottom, +1/+1 in width,
    # channels padded to Cin_p.  Padded rows/channels contribute exactly 0 to
    # the conv output (weights there are zero), so BN sums stay exact when
    # divided by the true P below.
    x_pad = jnp.pad(
        x_nhwc, ((0, 0), (1, 1 + (H_t - H)), (1, 1), (0, Cin_p - Cin))
    ).astype(mxu_dtype)
    w_mat = jnp.pad(
        w_hwio, ((0, 0), (0, 0), (0, Cin_p - Cin), (0, Cp - C))
    ).reshape(9, Cin_p, Cp).astype(mxu_dtype)

    # ---- pass 1: fused im2col + conv matmul + per-tile BN partial sums ------
    kern = functools.partial(conv3x3_stats_kernel, th=th, width=W, cin=Cin_p)
    y_raw, part = pl.pallas_call(
        kern,
        out_shape=(jax.ShapeDtypeStruct((Pp, Cp), jnp.float32),
                   jax.ShapeDtypeStruct((nt, 8, Cp), jnp.float32)),
        grid=(N, nh),
        in_specs=[
            # Whole padded image per n; h is the inner grid axis so this block
            # is DMA'd only when n changes.
            # TODO(synk): for very large H*W this block should become a
            # manually pipelined haloed-strip DMA instead of a whole image.
            pl.BlockSpec((1, H_t + 2, W + 2, Cin_p), lambda n, h: (n, 0, 0, 0)),
            pl.BlockSpec((9, Cin_p, Cp), lambda n, h: (0, 0, 0)),
        ],
        out_specs=(
            pl.BlockSpec((rows, Cp), lambda n, h: (n * nh + h, 0)),
            pl.BlockSpec((1, 8, Cp), lambda n, h: (n * nh + h, 0, 0)),
        ),
        compiler_params=pltpu.CompilerParams(
            dimension_semantics=("parallel", "arbitrary")),
    )(x_pad, w_mat)

    # ---- tiny cross-tile reduction + fold BN affine into (scale, shift) -----
    inv_p = 1.0 / float(P)                            # compile-time constant
    mean = jnp.sum(part[:, 0, :], axis=0) * inv_p
    var = jnp.sum(part[:, 1, :], axis=0) * inv_p - mean * mean
    inv_std = jax.lax.rsqrt(var + EPS)
    g = jnp.pad(gamma.reshape(-1).astype(jnp.float32), (0, Cp - C),
                constant_values=1.0)
    b = jnp.pad(beta.reshape(-1).astype(jnp.float32), (0, Cp - C))
    scale = (g * inv_std).reshape(1, Cp)
    shift = (b - mean * g * inv_std).reshape(1, Cp)

    # ---- pass 2: fused (x * scale + shift) + ReLU, in place on y_raw --------
    rows2 = _choose_rows2(Pp, rows, Cp)
    out = pl.pallas_call(
        bn_relu_kernel,
        out_shape=jax.ShapeDtypeStruct((Pp, Cp), jnp.float32),
        grid=(Pp // rows2,),
        in_specs=[
            pl.BlockSpec((rows2, Cp), lambda i: (i, 0)),
            pl.BlockSpec((1, Cp), lambda i: (0, 0)),
            pl.BlockSpec((1, Cp), lambda i: (0, 0)),
        ],
        out_specs=pl.BlockSpec((rows2, Cp), lambda i: (i, 0)),
        input_output_aliases={0: 0},                  # reuse the pass-1 buffer
        compiler_params=pltpu.CompilerParams(
            dimension_semantics=("parallel",)),
    )(y_raw, scale, shift)

    return out.reshape(N, H_t, W, Cp)[:, :H, :, :C]


def double_conv2d(x_nchw, w1, g1, b1, w2, g2, b2, *, tile_rows=256,
                  mxu_dtype=jnp.float32):
    """w1: (3,3,Cin,C) HWIO, w2: (3,3,C,C) HWIO, g*/b*: (1,C). Returns NCHW."""
    x = jnp.transpose(x_nchw, (0, 2, 3, 1))                      # NCHW -> NHWC
    y = _conv_bn_relu_block(x, w1, g1, b1, tile_rows=tile_rows,
                            mxu_dtype=mxu_dtype)
    y = _conv_bn_relu_block(y, w2, g2, b2, tile_rows=tile_rows,
                            mxu_dtype=mxu_dtype)
    return jnp.transpose(y, (0, 3, 1, 2))                        # NHWC -> NCHW


def reference(x_nchw, w1, g1, b1, w2, g2, b2):
    # pure-JAX reference of the same math (Conv -> BN(train) -> ReLU, twice)
    x = jnp.transpose(x_nchw, (0, 2, 3, 1))

    def block(x, w, g, b):
        y = jax.lax.conv_general_dilated(
            x, w, window_strides=(1, 1), padding="SAME",
            dimension_numbers=("NHWC", "HWIO", "NHWC"))
        mean = jnp.mean(y, axis=(0, 1, 2), keepdims=True)
        var = jnp.mean((y - mean) ** 2, axis=(0, 1, 2), keepdims=True)
        y = (y - mean) * jax.lax.rsqrt(var + EPS)
        y = y * g.reshape(1, 1, 1, -1) + b.reshape(1, 1, 1, -1)
        return jnp.maximum(y, 0.0)

    y = block(x, w1, g1, b1)
    y = block(y, w2, g2, b2)
    return jnp.transpose(y, (0, 3, 1, 2))


if __name__ == "__main__":
    N, Cin, H, W = 2, 4, 16, 16
    Cout = 8

    key = jax.random.PRNGKey(0)
    kx, kw1, kw2 = jax.random.split(key, 3)
    x = jax.random.normal(kx, (N, Cin, H, W), jnp.float32)
    # Deterministic synthetic parameter init (Conv2d has bias=False in the module).
    w1 = jax.random.normal(kw1, (3, 3, Cin, Cout), jnp.float32) * 0.1   # HWIO
    w2 = jax.random.normal(kw2, (3, 3, Cout, Cout), jnp.float32) * 0.1  # HWIO
    g1 = jnp.ones((1, Cout), jnp.float32)   # BatchNorm2d default weight=1
    b1 = jnp.zeros((1, Cout), jnp.float32)  # BatchNorm2d default bias=0
    g2 = jnp.ones((1, Cout), jnp.float32)
    b2 = jnp.zeros((1, Cout), jnp.float32)

    # tile_rows=128 -> 8-row strips (2 strips per 16-row image) so the haloed
    # multi-strip path is exercised at this small size.  f32 MXU operands keep
    # exact module semantics; pass mxu_dtype=jnp.bfloat16 for v5e/v6e speed.
    run = jax.jit(functools.partial(double_conv2d, tile_rows=128))
    out = jax.block_until_ready(run(x, w1, g1, b1, w2, g2, b2))

    ref = jax.block_until_ready(reference(x, w1, g1, b1, w2, g2, b2))
    assert out.shape == (N, Cout, H, W)
    assert jnp.max(jnp.abs(out - ref)) < 1e-4, "mismatch vs JAX reference"

    print("KERNEL_OK")
</pallas_src>

<mosaic_0001>
module attributes {stable_mosaic.version = 11 : i64} {
  func.func @conv3x3_stats_kernel(%arg0: i32, %arg1: i32, %arg2: memref<1x18x18x8xf32, #tpu.memory_space<vmem>>, %arg3: memref<9x8x128xf32, #tpu.memory_space<vmem>>, %arg4: memref<128x128xf32, #tpu.memory_space<vmem>>, %arg5: memref<1x8x128xf32, #tpu.memory_space<vmem>>) attributes {dimension_semantics = [#tpu.dimension_semantics<parallel>, #tpu.dimension_semantics<arbitrary>], iteration_bounds = array<i64: 2, 2>, scalar_prefetch = 0 : i64, scratch_operands = 0 : i64, tpu.core_type = #tpu.core_type<tc>, window_params = [{transform_indices = @transform_0, window_bounds = array<i64: 1, 18, 18, 8>}, {pipeline_mode = #tpu.pipeline_mode<synchronous>, transform_indices = @transform_1, window_bounds = array<i64: 9, 8, 128>}, {transform_indices = @transform_2, window_bounds = array<i64: 128, 128>}, {transform_indices = @transform_3, window_bounds = array<i64: 1, 8, 128>}]} {
    %c8_i32 = arith.constant 8 : i32
    %0 = arith.muli %arg1, %c8_i32 : i32
    %cst = arith.constant 0.000000e+00 : f32
    %1 = vector.broadcast %cst : f32 to vector<128x128xf32>
    %c0_i32 = arith.constant 0 : i32
    %2 = arith.addi %0, %c0_i32 : i32
    %c0 = arith.constant 0 : index
    %3 = arith.index_cast %2 : i32 to index
    %c0_0 = arith.constant 0 : index
    %c0_1 = arith.constant 0 : index
    %4 = vector.load %arg2[%c0, %3, %c0_0, %c0_1] : memref<1x18x18x8xf32, #tpu.memory_space<vmem>>, vector<1x8x16x8xf32>
    %5 = vector.shape_cast %4 : vector<1x8x16x8xf32> to vector<8x16x8xf32>
    %6 = vector.shape_cast %5 : vector<8x16x8xf32> to vector<128x8xf32>
    %c0_2 = arith.constant 0 : index
    %c0_3 = arith.constant 0 : index
    %c0_4 = arith.constant 0 : index
    %7 = vector.load %arg3[%c0_2, %c0_3, %c0_4] : memref<9x8x128xf32, #tpu.memory_space<vmem>>, vector<1x8x128xf32>
    %8 = vector.shape_cast %7 : vector<1x8x128xf32> to vector<8x128xf32>
    %cst_5 = arith.constant dense<0.000000e+00> : vector<128x128xf32>
    %9 = tpu.matmul %6, %8, %cst_5 {dimension_numbers = #tpu.dot_dimension_numbers<[1], [0], [0], [1], [0, 0, 1, 1], [], []>} : vector<128x8xf32>, vector<8x128xf32>, vector<128x128xf32> -> vector<128x128xf32>
    %10 = arith.addf %1, %9 : vector<128x128xf32>
    %c0_i32_6 = arith.constant 0 : i32
    %11 = arith.addi %0, %c0_i32_6 : i32
    %c0_7 = arith.constant 0 : index
    %12 = arith.index_cast %11 : i32 to index
    %c1 = arith.constant 1 : index
    %c0_8 = arith.constant 0 : index
    %13 = vector.load %arg2[%c0_7, %12, %c1, %c0_8] : memref<1x18x18x8xf32, #tpu.memory_space<vmem>>, vector<1x8x16x8xf32>
    %14 = vector.shape_cast %13 : vector<1x8x16x8xf32> to vector<8x16x8xf32>
    %15 = vector.shape_cast %14 : vector<8x16x8xf32> to vector<128x8xf32>
    %c1_9 = arith.constant 1 : index
    %c0_10 = arith.constant 0 : index
    %c0_11 = arith.constant 0 : index
    %16 = vector.load %arg3[%c1_9, %c0_10, %c0_11] : memref<9x8x128xf32, #tpu.memory_space<vmem>>, vector<1x8x128xf32>
    %17 = vector.shape_cast %16 : vector<1x8x128xf32> to vector<8x128xf32>
    %cst_12 = arith.constant dense<0.000000e+00> : vector<128x128xf32>
    %18 = tpu.matmul %15, %17, %cst_12 {dimension_numbers = #tpu.dot_dimension_numbers<[1], [0], [0], [1], [0, 0, 1, 1], [], []>} : vector<128x8xf32>, vector<8x128xf32>, vector<128x128xf32> -> vector<128x128xf32>
    %19 = arith.addf %10, %18 : vector<128x128xf32>
    %c0_i32_13 = arith.constant 0 : i32
    %20 = arith.addi %0, %c0_i32_13 : i32
    %c0_14 = arith.constant 0 : index
    %21 = arith.index_cast %20 : i32 to index
    %c2 = arith.constant 2 : index
    %c0_15 = arith.constant 0 : index
    %22 = vector.load %arg2[%c0_14, %21, %c2, %c0_15] : memref<1x18x18x8xf32, #tpu.memory_space<vmem>>, vector<1x8x16x8xf32>
    %23 = vector.shape_cast %22 : vector<1x8x16x8xf32> to vector<8x16x8xf32>
    %24 = vector.shape_cast %23 : vector<8x16x8xf32> to vector<128x8xf32>
    %c2_16 = arith.constant 2 : index
    %c0_17 = arith.constant 0 : index
    %c0_18 = arith.constant 0 : index
    %25 = vector.load %arg3[%c2_16, %c0_17, %c0_18] : memref<9x8x128xf32, #tpu.memory_space<vmem>>, vector<1x8x128xf32>
    %26 = vector.shape_cast %25 : vector<1x8x128xf32> to vector<8x128xf32>
    %cst_19 = arith.constant dense<0.000000e+00> : vector<128x128xf32>
    %27 = tpu.matmul %24, %26, %cst_19 {dimension_numbers = #tpu.dot_dimension_numbers<[1], [0], [0], [1], [0, 0, 1, 1], [], []>} : vector<128x8xf32>, vector<8x128xf32>, vector<128x128xf32> -> vector<128x128xf32>
    %28 = arith.addf %19, %27 : vector<128x128xf32>
    %c1_i32 = arith.constant 1 : i32
    %29 = arith.addi %0, %c1_i32 : i32
    %c0_20 = arith.constant 0 : index
    %30 = arith.index_cast %29 : i32 to index
    %c0_21 = arith.constant 0 : index
    %c0_22 = arith.constant 0 : index
    %31 = vector.load %arg2[%c0_20, %30, %c0_21, %c0_22] : memref<1x18x18x8xf32, #tpu.memory_space<vmem>>, vector<1x8x16x8xf32>
    %32 = vector.shape_cast %31 : vector<1x8x16x8xf32> to vector<8x16x8xf32>
    %33 = vector.shape_cast %32 : vector<8x16x8xf32> to vector<128x8xf32>
    %c3 = arith.constant 3 : index
    %c0_23 = arith.constant 0 : index
    %c0_24 = arith.constant 0 : index
    %34 = vector.load %arg3[%c3, %c0_23, %c0_24] : memref<9x8x128xf32, #tpu.memory_space<vmem>>, vector<1x8x128xf32>
    %35 = vector.shape_cast %34 : vector<1x8x128xf32> to vector<8x128xf32>
    %cst_25 = arith.constant dense<0.000000e+00> : vector<128x128xf32>
    %36 = tpu.matmul %33, %35, %cst_25 {dimension_numbers = #tpu.dot_dimension_numbers<[1], [0], [0], [1], [0, 0, 1, 1], [], []>} : vector<128x8xf32>, vector<8x128xf32>, vector<128x128xf32> -> vector<128x128xf32>
    %37 = arith.addf %28, %36 : vector<128x128xf32>
    %c1_i32_26 = arith.constant 1 : i32
    %38 = arith.addi %0, %c1_i32_26 : i32
    %c0_27 = arith.constant 0 : index
    %39 = arith.index_cast %38 : i32 to index
    %c1_28 = arith.constant 1 : index
    %c0_29 = arith.constant 0 : index
    %40 = vector.load %arg2[%c0_27, %39, %c1_28, %c0_29] : memref<1x18x18x8xf32, #tpu.memory_space<vmem>>, vector<1x8x16x8xf32>
    %41 = vector.shape_cast %40 : vector<1x8x16x8xf32> to vector<8x16x8xf32>
    %42 = vector.shape_cast %41 : vector<8x16x8xf32> to vector<128x8xf32>
    %c4 = arith.constant 4 : index
    %c0_30 = arith.constant 0 : index
    %c0_31 = arith.constant 0 : index
    %43 = vector.load %arg3[%c4, %c0_30, %c0_31] : memref<9x8x128xf32, #tpu.memory_space<vmem>>, vector<1x8x128xf32>
    %44 = vector.shape_cast %43 : vector<1x8x128xf32> to vector<8x128xf32>
    %cst_32 = arith.constant dense<0.000000e+00> : vector<128x128xf32>
    %45 = tpu.matmul %42, %44, %cst_32 {dimension_numbers = #tpu.dot_dimension_numbers<[1], [0], [0], [1], [0, 0, 1, 1], [], []>} : vector<128x8xf32>, vector<8x128xf32>, vector<128x128xf32> -> vector<128x128xf32>
    %46 = arith.addf %37, %45 : vector<128x128xf32>
    %c1_i32_33 = arith.constant 1 : i32
    %47 = arith.addi %0, %c1_i32_33 : i32
    %c0_34 = arith.constant 0 : index
    %48 = arith.index_cast %47 : i32 to index
    %c2_35 = arith.constant 2 : index
    %c0_36 = arith.constant 0 : index
    %49 = vector.load %arg2[%c0_34, %48, %c2_35, %c0_36] : memref<1x18x18x8xf32, #tpu.memory_space<vmem>>, vector<1x8x16x8xf32>
    %50 = vector.shape_cast %49 : vector<1x8x16x8xf32> to vector<8x16x8xf32>
    %51 = vector.shape_cast %50 : vector<8x16x8xf32> to vector<128x8xf32>
    %c5 = arith.constant 5 : index
    %c0_37 = arith.constant 0 : index
    %c0_38 = arith.constant 0 : index
    %52 = vector.load %arg3[%c5, %c0_37, %c0_38] : memref<9x8x128xf32, #tpu.memory_space<vmem>>, vector<1x8x128xf32>
    %53 = vector.shape_cast %52 : vector<1x8x128xf32> to vector<8x128xf32>
    %cst_39 = arith.constant dense<0.000000e+00> : vector<128x128xf32>
    %54 = tpu.matmul %51, %53, %cst_39 {dimension_numbers = #tpu.dot_dimension_numbers<[1], [0], [0], [1], [0, 0, 1, 1], [], []>} : vector<128x8xf32>, vector<8x128xf32>, vector<128x128xf32> -> vector<128x128xf32>
    %55 = arith.addf %46, %54 : vector<128x128xf32>
    %c2_i32 = arith.constant 2 : i32
    %56 = arith.addi %0, %c2_i32 : i32
    %c0_40 = arith.constant 0 : index
    %57 = arith.index_cast %56 : i32 to index
    %c0_41 = arith.constant 0 : index
    %c0_42 = arith.constant 0 : index
    %58 = vector.load %arg2[%c0_40, %57, %c0_41, %c0_42] : memref<1x18x18x8xf32, #tpu.memory_space<vmem>>, vector<1x8x16x8xf32>
    %59 = vector.shape_cast %58 : vector<1x8x16x8xf32> to vector<8x16x8xf32>
    %60 = vector.shape_cast %59 : vector<8x16x8xf32> to vector<128x8xf32>
    %c6 = arith.constant 6 : index
    %c0_43 = arith.constant 0 : index
    %c0_44 = arith.constant 0 : index
    %61 = vector.load %arg3[%c6, %c0_43, %c0_44] : memref<9x8x128xf32, #tpu.memory_space<vmem>>, vector<1x8x128xf32>
    %62 = vector.shape_cast %61 : vector<1x8x128xf32> to vector<8x128xf32>
    %cst_45 = arith.constant dense<0.000000e+00> : vector<128x128xf32>
    %63 = tpu.matmul %60, %62, %cst_45 {dimension_numbers = #tpu.dot_dimension_numbers<[1], [0], [0], [1], [0, 0, 1, 1], [], []>} : vector<128x8xf32>, vector<8x128xf32>, vector<128x128xf32> -> vector<128x128xf32>
    %64 = arith.addf %55, %63 : vector<128x128xf32>
    %c2_i32_46 = arith.constant 2 : i32
    %65 = arith.addi %0, %c2_i32_46 : i32
    %c0_47 = arith.constant 0 : index
    %66 = arith.index_cast %65 : i32 to index
    %c1_48 = arith.constant 1 : index
    %c0_49 = arith.constant 0 : index
    %67 = vector.load %arg2[%c0_47, %66, %c1_48, %c0_49] : memref<1x18x18x8xf32, #tpu.memory_space<vmem>>, vector<1x8x16x8xf32>
    %68 = vector.shape_cast %67 : vector<1x8x16x8xf32> to vector<8x16x8xf32>
    %69 = vector.shape_cast %68 : vector<8x16x8xf32> to vector<128x8xf32>
    %c7 = arith.constant 7 : index
    %c0_50 = arith.constant 0 : index
    %c0_51 = arith.constant 0 : index
    %70 = vector.load %arg3[%c7, %c0_50, %c0_51] : memref<9x8x128xf32, #tpu.memory_space<vmem>>, vector<1x8x128xf32>
    %71 = vector.shape_cast %70 : vector<1x8x128xf32> to vector<8x128xf32>
    %cst_52 = arith.constant dense<0.000000e+00> : vector<128x128xf32>
    %72 = tpu.matmul %69, %71, %cst_52 {dimension_numbers = #tpu.dot_dimension_numbers<[1], [0], [0], [1], [0, 0, 1, 1], [], []>} : vector<128x8xf32>, vector<8x128xf32>, vector<128x128xf32> -> vector<128x128xf32>
    %73 = arith.addf %64, %72 : vector<128x128xf32>
    %c2_i32_53 = arith.constant 2 : i32
    %74 = arith.addi %0, %c2_i32_53 : i32
    %c0_54 = arith.constant 0 : index
    %75 = arith.index_cast %74 : i32 to index
    %c2_55 = arith.constant 2 : index
    %c0_56 = arith.constant 0 : index
    %76 = vector.load %arg2[%c0_54, %75, %c2_55, %c0_56] : memref<1x18x18x8xf32, #tpu.memory_space<vmem>>, vector<1x8x16x8xf32>
    %77 = vector.shape_cast %76 : vector<1x8x16x8xf32> to vector<8x16x8xf32>
    %78 = vector.shape_cast %77 : vector<8x16x8xf32> to vector<128x8xf32>
    %c8 = arith.constant 8 : index
    %c0_57 = arith.constant 0 : index
    %c0_58 = arith.constant 0 : index
    %79 = vector.load %arg3[%c8, %c0_57, %c0_58] : memref<9x8x128xf32, #tpu.memory_space<vmem>>, vector<1x8x128xf32>
    %80 = vector.shape_cast %79 : vector<1x8x128xf32> to vector<8x128xf32>
    %cst_59 = arith.constant dense<0.000000e+00> : vector<128x128xf32>
    %81 = tpu.matmul %78, %80, %cst_59 {dimension_numbers = #tpu.dot_dimension_numbers<[1], [0], [0], [1], [0, 0, 1, 1], [], []>} : vector<128x8xf32>, vector<8x128xf32>, vector<128x128xf32> -> vector<128x128xf32>
    %82 = arith.addf %73, %81 : vector<128x128xf32>
    %c0_60 = arith.constant 0 : index
    %c0_61 = arith.constant 0 : index
    %83 = vector.load %arg4[%c0_60, %c0_61] : memref<128x128xf32, #tpu.memory_space<vmem>>, vector<128x128xf32>
    tpu.vector_store %arg4[%c0_60, %c0_61], %82 {strides = array<i32>} : memref<128x128xf32, #tpu.memory_space<vmem>>, vector<128x128xf32>,
    %cst_62 = arith.constant dense<0.000000e+00> : vector<128xf32>
    %84 = vector.multi_reduction <add>, %82, %cst_62 [0] : vector<128x128xf32> to vector<128xf32>
    %85 = vector.shape_cast %84 : vector<128xf32> to vector<1x128xf32>
    %86 = arith.mulf %82, %82 : vector<128x128xf32>
    %cst_63 = arith.constant dense<0.000000e+00> : vector<128xf32>
    %87 = vector.multi_reduction <add>, %86, %cst_63 [0] : vector<128x128xf32> to vector<128xf32>
    %88 = vector.shape_cast %87 : vector<128xf32> to vector<1x128xf32>
    %cst_64 = arith.constant 0.000000e+00 : f32
    %89 = vector.broadcast %cst_64 : f32 to vector<6x128xf32>
    %90 = tpu.concatenate %85, %88, %89 in 0 : vector<1x128xf32>, vector<1x128xf32>, vector<6x128xf32> -> vector<8x128xf32>
    %91 = vector.shape_cast %90 : vector<8x128xf32> to vector<1x8x128xf32>
    %c0_65 = arith.constant 0 : index
    %c0_66 = arith.constant 0 : index
    %c0_67 = arith.constant 0 : index
    %92 = vector.load %arg5[%c0_65, %c0_66, %c0_67] : memref<1x8x128xf32, #tpu.memory_space<vmem>>, vector<1x8x128xf32>
    tpu.vector_store %arg5[%c0_65, %c0_66, %c0_67], %91 {strides = array<i32>} : memref<1x8x128xf32, #tpu.memory_space<vmem>>, vector<1x8x128xf32>,
    return
  }
  func.func @transform_0(%arg0: i32, %arg1: i32) -> (i32, i32, i32, i32) {
    %c0_i32 = arith.constant 0 : i32
    %c0_i32_0 = arith.constant 0 : i32
    %c0_i32_1 = arith.constant 0 : i32
    %c0_i32_2 = arith.constant 0 : i32
    return %arg0, %c0_i32, %c0_i32_0, %c0_i32_1 : i32, i32, i32, i32
  }
  func.func @transform_1(%arg0: i32, %arg1: i32) -> (i32, i32, i32) {
    %c0_i32 = arith.constant 0 : i32
    %c0_i32_0 = arith.constant 0 : i32
    %c0_i32_1 = arith.constant 0 : i32
    %c0_i32_2 = arith.constant 0 : i32
    return %c0_i32, %c0_i32_0, %c0_i32_1 : i32, i32, i32
  }
  func.func @transform_2(%arg0: i32, %arg1: i32) -> (i32, i32) {
    %c2_i32 = arith.constant 2 : i32
    %0 = arith.muli %arg0, %c2_i32 : i32
    %1 = arith.addi %0, %arg1 : i32
    %c0_i32 = arith.constant 0 : i32
    %c0_i32_0 = arith.constant 0 : i32
    return %1, %c0_i32 : i32, i32
  }
  func.func @transform_3(%arg0: i32, %arg1: i32) -> (i32, i32, i32) {
    %c2_i32 = arith.constant 2 : i32
    %0 = arith.muli %arg0, %c2_i32 : i32
    %1 = arith.addi %0, %arg1 : i32
    %c0_i32 = arith.constant 0 : i32
    %c0_i32_0 = arith.constant 0 : i32
    %c0_i32_1 = arith.constant 0 : i32
    return %1, %c0_i32, %c0_i32_0 : i32, i32, i32
  }
}

module attributes {stable_mosaic.version = 11 : i64} {
  func.func @bn_relu_kernel(%arg0: i32, %arg1: memref<512x128xf32, #tpu.memory_space<vmem>>, %arg2: memref<1x128xf32, #tpu.memory_space<vmem>>, %arg3: memref<1x128xf32, #tpu.memory_space<vmem>>, %arg4: memref<512x128xf32, #tpu.memory_space<vmem>>) attributes {dimension_semantics = [#tpu.dimension_semantics<parallel>], iteration_bounds = array<i64: 1>, scalar_prefetch = 0 : i64, scratch_operands = 0 : i64, tpu.core_type = #tpu.core_type<tc>, window_params = [{transform_indices = @transform_0, window_bounds = array<i64: 512, 128>}, {pipeline_mode = #tpu.pipeline_mode<synchronous>, transform_indices = @transform_1, window_bounds = array<i64: 1, 128>}, {pipeline_mode = #tpu.pipeline_mode<synchronous>, transform_indices = @transform_2, window_bounds = array<i64: 1, 128>}, {transform_indices = @transform_3, window_bounds = array<i64: 512, 128>}]} {
    %c0 = arith.constant 0 : index
    %c0_0 = arith.constant 0 : index
    %0 = vector.load %arg1[%c0, %c0_0] : memref<512x128xf32, #tpu.memory_space<vmem>>, vector<512x128xf32>
    %c0_1 = arith.constant 0 : index
    %c0_2 = arith.constant 0 : index
    %1 = vector.load %arg2[%c0_1, %c0_2] : memref<1x128xf32, #tpu.memory_space<vmem>>, vector<1x128xf32>
    %2 = vector.broadcast %1 : vector<1x128xf32> to vector<512x128xf32>
    %3 = arith.mulf %0, %2 : vector<512x128xf32>
    %c0_3 = arith.constant 0 : index
    %c0_4 = arith.constant 0 : index
    %4 = vector.load %arg3[%c0_3, %c0_4] : memref<1x128xf32, #tpu.memory_space<vmem>>, vector<1x128xf32>
    %5 = vector.broadcast %4 : vector<1x128xf32> to vector<512x128xf32>
    %6 = arith.addf %3, %5 : vector<512x128xf32>
    %cst = arith.constant 0.000000e+00 : f32
    %7 = vector.broadcast %cst : f32 to vector<512x128xf32>
    %8 = arith.maximumf %6, %7 : vector<512x128xf32>
    %c0_5 = arith.constant 0 : index
    %c0_6 = arith.constant 0 : index
    %9 = vector.load %arg4[%c0_5, %c0_6] : memref<512x128xf32, #tpu.memory_space<vmem>>, vector<512x128xf32>
    tpu.vector_store %arg4[%c0_5, %c0_6], %8 {strides = array<i32>} : memref<512x128xf32, #tpu.memory_space<vmem>>, vector<512x128xf32>,
    return
  }
  func.func @transform_0(%arg0: i32) -> (i32, i32) {
    %c0_i32 = arith.constant 0 : i32
    %c0_i32_0 = arith.constant 0 : i32
    return %arg0, %c0_i32 : i32, i32
  }
  func.func @transform_1(%arg0: i32) -> (i32, i32) {
    %c0_i32 = arith.constant 0 : i32
    %c0_i32_0 = arith.constant 0 : i32
    %c0_i32_1 = arith.constant 0 : i32
    return %c0_i32, %c0_i32_0 : i32, i32
  }
  func.func @transform_2(%arg0: i32) -> (i32, i32) {
    %c0_i32 = arith.constant 0 : i32
    %c0_i32_0 = arith.constant 0 : i32
    %c0_i32_1 = arith.constant 0 : i32
    return %c0_i32, %c0_i32_0 : i32, i32
  }
  func.func @transform_3(%arg0: i32) -> (i32, i32) {
    %c0_i32 = arith.constant 0 : i32
    %c0_i32_0 = arith.constant 0 : i32
    return %arg0, %c0_i32 : i32, i32
  }
}

</mosaic_0001>

<bundles_post_ra>
// kernel: double_conv2d.5
= control target key start
LH: loop header
LB: loop body
LE: loop exit
PB: predicated region body
PF: predicated region fallthrough
CT: control target
= control target key end

     0   :  { %s896_s0 = inlined_call_operand.vmem [shape: f32[512,128], index: 0, kind: input, shape index: {}, may-alias: {0,3}]   ;;  %s897_s1 = inlined_call_operand.vmem [shape: f32[1,128], index: 1, kind: input, shape index: {}]   ;;  %s898_s2 = inlined_call_operand.vmem [shape: f32[1,128], index: 2, kind: input, shape index: {}]   ;;  %s899_s3 = inlined_call_operand.vmem [shape: f32[512,128], index: 3, kind: output, shape index: {}, may-alias: {0,3}]  }
   0x1   :  { %v14_v0 = vld [vmem:[%s896_s0] sm:$0xff]  ;;  %v15_v4 = vld [vmem:[%s896_s0 + $0x8] sm:$0xff]  ;;  %v16_v5 = vld [vmem:[%s896_s0 + $0x10] sm:$0xff] }
   0x2   :  { %v380_v1 = vld [vmem:[%s897_s1] ss:$0 sm:$0xff]  ;;  %v17_v6 = vld [vmem:[%s896_s0 + $0x18] sm:$0xff]  ;;  %v19_v11 = vld [vmem:[%s896_s0 + $0x28] sm:$0xff] }
   0x3   :  { %v385_v2 = vld [vmem:[%s898_s2] ss:$0 sm:$0xff]  ;;  %v85_v3 = vmul.f32 %v380_v1, %v14_v0  ;;  %v86_v7 = vmul.f32 %v380_v1, %v15_v4  ;;  %v87_v8 = vmul.f32 %v380_v1, %v16_v5  ;;  %v88_v9 = vmul.f32 %v380_v1, %v17_v6  ;;  %v20_v12 = vld [vmem:[%s896_s0 + $0x30] sm:$0xff]  ;;  %v21_v17 = vld [vmem:[%s896_s0 + $0x38] sm:$0xff] }
   0x4   :  { %v18_v10 = vld [vmem:[%s896_s0 + $0x20] sm:$0xff]  ;;  %v90_v15 = vmul.f32 %v380_v1, %v19_v11  ;;  %v91_v16 = vmul.f32 %v380_v1, %v20_v12  ;;  %v92_v21 = vmul.f32 %v380_v1, %v21_v17  ;;  %v23_v27 = vld [vmem:[%s896_s0 + $0x48] sm:$0xff]  ;;  %v24_v28 = vld [vmem:[%s896_s0 + $0x50] sm:$0xff] }
   0x5   :  { %v156_v13 = vadd.f32 %v385_v2, %v85_v3  ;;  %v89_v14 = vmul.f32 %v380_v1, %v18_v10  ;;  %v157_v18 = vadd.f32 %v385_v2, %v86_v7  ;;  %v158_v19 = vadd.f32 %v385_v2, %v87_v8  ;;  %v22_v22 = vld [vmem:[%s896_s0 + $0x40] sm:$0xff]  ;;  %v25_v29 = vld [vmem:[%s896_s0 + $0x58] sm:$0xff]  ;;  %v27_v35 = vld [vmem:[%s896_s0 + $0x68] sm:$0xff] }
   0x6   :  { %v159_v20 = vadd.f32 %v385_v2, %v88_v9  ;;  %v161_v25 = vadd.f32 %v385_v2, %v90_v15  ;;  %v162_v26 = vadd.f32 %v385_v2, %v91_v16  ;;  %v163_v33 = vadd.f32 %v385_v2, %v92_v21  ;;  %v26_v34 = vld [vmem:[%s896_s0 + $0x60] sm:$0xff]  ;;  %v28_v36 = vld [vmem:[%s896_s0 + $0x70] sm:$0xff] }
   0x7   :  { %v220_v23 = vmax.f32 %v156_v13, 0.0  ;;  %v160_v24 = vadd.f32 %v385_v2, %v89_v14  ;;  %v221_v30 = vmax.f32 %v157_v18, 0.0  ;;  %v222_v31 = vmax.f32 %v158_v19, 0.0 }
   0x8   :  { %v223_v32 = vmax.f32 %v159_v20, 0.0  ;;  %v225_v38 = vmax.f32 %v161_v25, 0.0  ;;  %v226_v39 = vmax.f32 %v162_v26, 0.0  ;;  %v93_v40 = vmul.f32 %v380_v1, %v22_v22 }
   0x9   :  { %284 = vst [vmem:[%s899_s3] sm:$0xff] %v220_v23  ;;  %v224_v37 = vmax.f32 %v160_v24, 0.0  ;;  %v227_v42 = vmax.f32 %v163_v33, 0.0  ;;  %v94_v43 = vmul.f32 %v380_v1, %v23_v27  ;;  %v95_v44 = vmul.f32 %v380_v1, %v24_v28 }
   0xa   :  { %v96_v45 = vmul.f32 %v380_v1, %v25_v29  ;;  %v164_v46 = vadd.f32 %v385_v2, %v93_v40  ;;  %v97_v47 = vmul.f32 %v380_v1, %v26_v34  ;;  %v98_v48 = vmul.f32 %v380_v1, %v27_v35 }
   0xb   :  { %v99_v49 = vmul.f32 %v380_v1, %v28_v36  ;;  %v165_v50 = vadd.f32 %v385_v2, %v94_v43  ;;  %v166_v51 = vadd.f32 %v385_v2, %v95_v44 }
   0xc   :  { %v167_v52 = vadd.f32 %v385_v2, %v96_v45  ;;  %v228_v55 = vmax.f32 %v164_v46, 0.0  ;;  %v168_v56 = vadd.f32 %v385_v2, %v97_v47  ;;  %v169_v57 = vadd.f32 %v385_v2, %v98_v48 }
   0xd   :  { %v170_v58 = vadd.f32 %v385_v2, %v99_v49  ;;  %v229_v62 = vmax.f32 %v165_v50, 0.0  ;;  %v230_v63 = vmax.f32 %v166_v51, 0.0 }
   0xe   :  { %v231_v0 = vmax.f32 %v167_v52, 0.0  ;;  %v232_v7 = vmax.f32 %v168_v56, 0.0  ;;  %v233_v8 = vmax.f32 %v169_v57, 0.0 }
   0xf   :  { %v234_v9 = vmax.f32 %v170_v58, 0.0 }
  0x10   :  { %v29_v41 = vld [vmem:[%s896_s0 + $0x78] sm:$0xff] }
  0x11   :  { %285 = vst [vmem:[%s899_s3 + $0x8] sm:$0xff] %v221_v30  ;;  %286 = vst [vmem:[%s899_s3 + $0x10] sm:$0xff] %v222_v31  ;;  %v100_v53 = vmul.f32 %v380_v1, %v29_v41 }
  0x12   :  { %287 = vst [vmem:[%s899_s3 + $0x18] sm:$0xff] %v223_v32  ;;  %288 = vst [vmem:[%s899_s3 + $0x20] sm:$0xff] %v224_v37 }
  0x13   :  { %289 = vst [vmem:[%s899_s3 + $0x28] sm:$0xff] %v225_v38  ;;  %290 = vst [vmem:[%s899_s3 + $0x30] sm:$0xff] %v226_v39  ;;  %v171_v3 = vadd.f32 %v385_v2, %v100_v53 }
  0x14   :  { %291 = vst [vmem:[%s899_s3 + $0x38] sm:$0xff] %v227_v42 }
  0x15   :  { %v235_v12 = vmax.f32 %v171_v3, 0.0 }
  0x1b   :  { %v30_v54 = vld [vmem:[%s896_s0 + $0x80] sm:$0xff]  ;;  %v31_v59 = vld [vmem:[%s896_s0 + $0x88] sm:$0xff]  ;;  %v32_v60 = vld [vmem:[%s896_s0 + $0x90] sm:$0xff] }
  0x1c   :  { %v33_v61 = vld [vmem:[%s896_s0 + $0x98] sm:$0xff]  ;;  %v34_v4 = vld [vmem:[%s896_s0 + $0xa0] sm:$0xff]  ;;  %v35_v5 = vld [vmem:[%s896_s0 + $0xa8] sm:$0xff]  ;;  %v101_v10 = vmul.f32 %v380_v1, %v30_v54  ;;  %v102_v13 = vmul.f32 %v380_v1, %v31_v59  ;;  %v103_v14 = vmul.f32 %v380_v1, %v32_v60 }
  0x1d   :  { %v36_v6 = vld [vmem:[%s896_s0 + $0xb0] sm:$0xff]  ;;  %v104_v15 = vmul.f32 %v380_v1, %v33_v61  ;;  %v105_v17 = vmul.f32 %v380_v1, %v34_v4  ;;  %v106_v18 = vmul.f32 %v380_v1, %v35_v5 }
  0x1e   :  { %292 = vst [vmem:[%s899_s3 + $0x40] sm:$0xff] %v228_v55  ;;  %v172_v16 = vadd.f32 %v385_v2, %v101_v10  ;;  %v107_v19 = vmul.f32 %v380_v1, %v36_v6  ;;  %v173_v20 = vadd.f32 %v385_v2, %v102_v13  ;;  %v174_v21 = vadd.f32 %v385_v2, %v103_v14 }
  0x1f   :  { %v175_v22 = vadd.f32 %v385_v2, %v104_v15  ;;  %v176_v26 = vadd.f32 %v385_v2, %v105_v17  ;;  %v177_v27 = vadd.f32 %v385_v2, %v106_v18 }
  0x20   :  { %v236_v25 = vmax.f32 %v172_v16, 0.0  ;;  %v178_v28 = vadd.f32 %v385_v2, %v107_v19  ;;  %v237_v32 = vmax.f32 %v173_v20, 0.0  ;;  %v238_v33 = vmax.f32 %v174_v21, 0.0 }
  0x21   :  { %v239_v34 = vmax.f32 %v175_v22, 0.0  ;;  %v240_v39 = vmax.f32 %v176_v26, 0.0  ;;  %v241_v40 = vmax.f32 %v177_v27, 0.0 }
  0x22   :  { %v242_v41 = vmax.f32 %v178_v28, 0.0 }
  0x25   :  { %v37_v11 = vld [vmem:[%s896_s0 + $0xb8] sm:$0xff] }
  0x26   :  { %293 = vst [vmem:[%s899_s3 + $0x48] sm:$0xff] %v229_v62  ;;  %294 = vst [vmem:[%s899_s3 + $0x50] sm:$0xff] %v230_v63  ;;  %v108_v23 = vmul.f32 %v380_v1, %v37_v11 }
  0x27   :  { %295 = vst [vmem:[%s899_s3 + $0x58] sm:$0xff] %v231_v0  ;;  %296 = vst [vmem:[%s899_s3 + $0x60] sm:$0xff] %v232_v7 }
  0x28   :  { %297 = vst [vmem:[%s899_s3 + $0x68] sm:$0xff] %v233_v8  ;;  %298 = vst [vmem:[%s899_s3 + $0x70] sm:$0xff] %v234_v9  ;;  %v179_v35 = vadd.f32 %v385_v2, %v108_v23 }
  0x29   :  { %299 = vst [vmem:[%s899_s3 + $0x78] sm:$0xff] %v235_v12 }
  0x2a   :  { %v243_v44 = vmax.f32 %v179_v35, 0.0 }
  0x30   :  { %v38_v24 = vld [vmem:[%s896_s0 + $0xc0] sm:$0xff]  ;;  %v39_v29 = vld [vmem:[%s896_s0 + $0xc8] sm:$0xff]  ;;  %v40_v30 = vld [vmem:[%s896_s0 + $0xd0] sm:$0xff] }
  0x31   :  { %v41_v31 = vld [vmem:[%s896_s0 + $0xd8] sm:$0xff]  ;;  %v42_v36 = vld [vmem:[%s896_s0 + $0xe0] sm:$0xff]  ;;  %v43_v37 = vld [vmem:[%s896_s0 + $0xe8] sm:$0xff]  ;;  %v109_v42 = vmul.f32 %v380_v1, %v38_v24  ;;  %v110_v45 = vmul.f32 %v380_v1, %v39_v29  ;;  %v111_v46 = vmul.f32 %v380_v1, %v40_v30 }
  0x32   :  { %v44_v38 = vld [vmem:[%s896_s0 + $0xf0] sm:$0xff]  ;;  %v112_v47 = vmul.f32 %v380_v1, %v41_v31  ;;  %v113_v49 = vmul.f32 %v380_v1, %v42_v36  ;;  %v114_v50 = vmul.f32 %v380_v1, %v43_v37 }
  0x33   :  { %300 = vst [vmem:[%s899_s3 + $0x80] sm:$0xff] %v236_v25  ;;  %v180_v48 = vadd.f32 %v385_v2, %v109_v42  ;;  %v115_v51 = vmul.f32 %v380_v1, %v44_v38  ;;  %v181_v52 = vadd.f32 %v385_v2, %v110_v45  ;;  %v182_v53 = vadd.f32 %v385_v2, %v111_v46 }
  0x34   :  { %v183_v54 = vadd.f32 %v385_v2, %v112_v47  ;;  %v184_v58 = vadd.f32 %v385_v2, %v113_v49  ;;  %v185_v59 = vadd.f32 %v385_v2, %v114_v50 }
  0x35   :  { %v244_v57 = vmax.f32 %v180_v48, 0.0  ;;  %v186_v60 = vadd.f32 %v385_v2, %v115_v51  ;;  %v245_v0 = vmax.f32 %v181_v52, 0.0  ;;  %v246_v3 = vmax.f32 %v182_v53, 0.0 }
  0x36   :  { %v247_v4 = vmax.f32 %v183_v54, 0.0  ;;  %v248_v9 = vmax.f32 %v184_v58, 0.0  ;;  %v249_v10 = vmax.f32 %v185_v59, 0.0 }
  0x37   :  { %v250_v11 = vmax.f32 %v186_v60, 0.0 }
  0x3a   :  { %v45_v43 = vld [vmem:[%s896_s0 + $0xf8] sm:$0xff] }
  0x3b   :  { %301 = vst [vmem:[%s899_s3 + $0x88] sm:$0xff] %v237_v32  ;;  %302 = vst [vmem:[%s899_s3 + $0x90] sm:$0xff] %v238_v33  ;;  %v116_v55 = vmul.f32 %v380_v1, %v45_v43 }
  0x3c   :  { %303 = vst [vmem:[%s899_s3 + $0x98] sm:$0xff] %v239_v34  ;;  %304 = vst [vmem:[%s899_s3 + $0xa0] sm:$0xff] %v240_v39 }
  0x3d   :  { %305 = vst [vmem:[%s899_s3 + $0xa8] sm:$0xff] %v241_v40  ;;  %306 = vst [vmem:[%s899_s3 + $0xb0] sm:$0xff] %v242_v41  ;;  %v187_v5 = vadd.f32 %v385_v2, %v116_v55 }
  0x3e   :  { %307 = vst [vmem:[%s899_s3 + $0xb8] sm:$0xff] %v243_v44 }
  0x3f   :  { %v251_v14 = vmax.f32 %v187_v5, 0.0 }
  0x45   :  { %v46_v56 = vld [vmem:[%s896_s0 + $0x100] sm:$0xff]  ;;  %v47_v61 = vld [vmem:[%s896_s0 + $0x108] sm:$0xff]  ;;  %v48_v62 = vld [vmem:[%s896_s0 + $0x110] sm:$0xff] }
  0x46   :  { %v49_v63 = vld [vmem:[%s896_s0 + $0x118] sm:$0xff]  ;;  %v50_v6 = vld [vmem:[%s896_s0 + $0x120] sm:$0xff]  ;;  %v51_v7 = vld [vmem:[%s896_s0 + $0x128] sm:$0xff]  ;;  %v117_v12 = vmul.f32 %v380_v1, %v46_v56  ;;  %v118_v15 = vmul.f32 %v380_v1, %v47_v61  ;;  %v119_v16 = vmul.f32 %v380_v1, %v48_v62 }
  0x47   :  { %v52_v8 = vld [vmem:[%s896_s0 + $0x130] sm:$0xff]  ;;  %v120_v17 = vmul.f32 %v380_v1, %v49_v63  ;;  %v121_v19 = vmul.f32 %v380_v1, %v50_v6  ;;  %v122_v20 = vmul.f32 %v380_v1, %v51_v7 }
  0x48   :  { %308 = vst [vmem:[%s899_s3 + $0xc0] sm:$0xff] %v244_v57  ;;  %v188_v18 = vadd.f32 %v385_v2, %v117_v12  ;;  %v123_v21 = vmul.f32 %v380_v1, %v52_v8  ;;  %v189_v22 = vadd.f32 %v385_v2, %v118_v15  ;;  %v190_v23 = vadd.f32 %v385_v2, %v119_v16 }
  0x49   :  { %v191_v24 = vadd.f32 %v385_v2, %v120_v17  ;;  %v192_v28 = vadd.f32 %v385_v2, %v121_v19  ;;  %v193_v29 = vadd.f32 %v385_v2, %v122_v20 }
  0x4a   :  { %v252_v27 = vmax.f32 %v188_v18, 0.0  ;;  %v194_v30 = vadd.f32 %v385_v2, %v123_v21  ;;  %v253_v34 = vmax.f32 %v189_v22, 0.0  ;;  %v254_v35 = vmax.f32 %v190_v23, 0.0 }
  0x4b   :  { %v255_v36 = vmax.f32 %v191_v24, 0.0  ;;  %v256_v41 = vmax.f32 %v192_v28, 0.0  ;;  %v257_v42 = vmax.f32 %v193_v29, 0.0 }
  0x4c   :  { %v258_v43 = vmax.f32 %v194_v30, 0.0 }
  0x4f   :  { %v53_v13 = vld [vmem:[%s896_s0 + $0x138] sm:$0xff] }
  0x50   :  { %309 = vst [vmem:[%s899_s3 + $0xc8] sm:$0xff] %v245_v0  ;;  %310 = vst [vmem:[%s899_s3 + $0xd0] sm:$0xff] %v246_v3  ;;  %v124_v25 = vmul.f32 %v380_v1, %v53_v13 }
  0x51   :  { %311 = vst [vmem:[%s899_s3 + $0xd8] sm:$0xff] %v247_v4  ;;  %312 = vst [vmem:[%s899_s3 + $0xe0] sm:$0xff] %v248_v9 }
  0x52   :  { %313 = vst [vmem:[%s899_s3 + $0xe8] sm:$0xff] %v249_v10  ;;  %314 = vst [vmem:[%s899_s3 + $0xf0] sm:$0xff] %v250_v11  ;;  %v195_v37 = vadd.f32 %v385_v2, %v124_v25 }
  0x53   :  { %315 = vst [vmem:[%s899_s3 + $0xf8] sm:$0xff] %v251_v14 }
  0x54   :  { %v259_v46 = vmax.f32 %v195_v37, 0.0 }
  0x5a   :  { %v54_v26 = vld [vmem:[%s896_s0 + $0x140] sm:$0xff]  ;;  %v55_v31 = vld [vmem:[%s896_s0 + $0x148] sm:$0xff]  ;;  %v56_v32 = vld [vmem:[%s896_s0 + $0x150] sm:$0xff] }
  0x5b   :  { %v57_v33 = vld [vmem:[%s896_s0 + $0x158] sm:$0xff]  ;;  %v58_v38 = vld [vmem:[%s896_s0 + $0x160] sm:$0xff]  ;;  %v59_v39 = vld [vmem:[%s896_s0 + $0x168] sm:$0xff]  ;;  %v125_v44 = vmul.f32 %v380_v1, %v54_v26  ;;  %v126_v47 = vmul.f32 %v380_v1, %v55_v31  ;;  %v127_v48 = vmul.f32 %v380_v1, %v56_v32 }
  0x5c   :  { %v60_v40 = vld [vmem:[%s896_s0 + $0x170] sm:$0xff]  ;;  %v128_v49 = vmul.f32 %v380_v1, %v57_v33  ;;  %v129_v51 = vmul.f32 %v380_v1, %v58_v38  ;;  %v130_v52 = vmul.f32 %v380_v1, %v59_v39 }
  0x5d   :  { %316 = vst [vmem:[%s899_s3 + $0x100] sm:$0xff] %v252_v27  ;;  %v196_v50 = vadd.f32 %v385_v2, %v125_v44  ;;  %v131_v53 = vmul.f32 %v380_v1, %v60_v40  ;;  %v197_v54 = vadd.f32 %v385_v2, %v126_v47  ;;  %v198_v55 = vadd.f32 %v385_v2, %v127_v48 }
  0x5e   :  { %v199_v56 = vadd.f32 %v385_v2, %v128_v49  ;;  %v200_v60 = vadd.f32 %v385_v2, %v129_v51  ;;  %v201_v61 = vadd.f32 %v385_v2, %v130_v52 }
  0x5f   :  { %v260_v59 = vmax.f32 %v196_v50, 0.0  ;;  %v202_v62 = vadd.f32 %v385_v2, %v131_v53  ;;  %v261_v4 = vmax.f32 %v197_v54, 0.0  ;;  %v262_v5 = vmax.f32 %v198_v55, 0.0 }
  0x60   :  { %v263_v6 = vmax.f32 %v199_v56, 0.0  ;;  %v264_v11 = vmax.f32 %v200_v60, 0.0  ;;  %v265_v12 = vmax.f32 %v201_v61, 0.0 }
  0x61   :  { %v266_v13 = vmax.f32 %v202_v62, 0.0 }
  0x64   :  { %v61_v45 = vld [vmem:[%s896_s0 + $0x178] sm:$0xff] }
  0x65   :  { %317 = vst [vmem:[%s899_s3 + $0x108] sm:$0xff] %v253_v34  ;;  %318 = vst [vmem:[%s899_s3 + $0x110] sm:$0xff] %v254_v35  ;;  %v132_v57 = vmul.f32 %v380_v1, %v61_v45 }
  0x66   :  { %319 = vst [vmem:[%s899_s3 + $0x118] sm:$0xff] %v255_v36  ;;  %320 = vst [vmem:[%s899_s3 + $0x120] sm:$0xff] %v256_v41 }
  0x67   :  { %321 = vst [vmem:[%s899_s3 + $0x128] sm:$0xff] %v257_v42  ;;  %322 = vst [vmem:[%s899_s3 + $0x130] sm:$0xff] %v258_v43  ;;  %v203_v7 = vadd.f32 %v385_v2, %v132_v57 }
  0x68   :  { %323 = vst [vmem:[%s899_s3 + $0x138] sm:$0xff] %v259_v46 }
  0x69   :  { %v267_v16 = vmax.f32 %v203_v7, 0.0 }
  0x6f   :  { %v62_v58 = vld [vmem:[%s896_s0 + $0x180] sm:$0xff]  ;;  %v63_v63 = vld [vmem:[%s896_s0 + $0x188] sm:$0xff]  ;;  %v64_v0 = vld [vmem:[%s896_s0 + $0x190] sm:$0xff] }
  0x70   :  { %v65_v3 = vld [vmem:[%s896_s0 + $0x198] sm:$0xff]  ;;  %v66_v8 = vld [vmem:[%s896_s0 + $0x1a0] sm:$0xff]  ;;  %v67_v9 = vld [vmem:[%s896_s0 + $0x1a8] sm:$0xff]  ;;  %v133_v14 = vmul.f32 %v380_v1, %v62_v58  ;;  %v134_v17 = vmul.f32 %v380_v1, %v63_v63  ;;  %v135_v18 = vmul.f32 %v380_v1, %v64_v0 }
  0x71   :  { %v68_v10 = vld [vmem:[%s896_s0 + $0x1b0] sm:$0xff]  ;;  %v136_v19 = vmul.f32 %v380_v1, %v65_v3  ;;  %v137_v21 = vmul.f32 %v380_v1, %v66_v8  ;;  %v138_v22 = vmul.f32 %v380_v1, %v67_v9 }
  0x72   :  { %324 = vst [vmem:[%s899_s3 + $0x140] sm:$0xff] %v260_v59  ;;  %v204_v20 = vadd.f32 %v385_v2, %v133_v14  ;;  %v139_v23 = vmul.f32 %v380_v1, %v68_v10  ;;  %v205_v24 = vadd.f32 %v385_v2, %v134_v17  ;;  %v206_v25 = vadd.f32 %v385_v2, %v135_v18 }
  0x73   :  { %v207_v26 = vadd.f32 %v385_v2, %v136_v19  ;;  %v208_v30 = vadd.f32 %v385_v2, %v137_v21  ;;  %v209_v31 = vadd.f32 %v385_v2, %v138_v22 }
  0x74   :  { %v268_v29 = vmax.f32 %v204_v20, 0.0  ;;  %v210_v32 = vadd.f32 %v385_v2, %v139_v23  ;;  %v269_v36 = vmax.f32 %v205_v24, 0.0  ;;  %v270_v37 = vmax.f32 %v206_v25, 0.0 }
  0x75   :  { %v271_v38 = vmax.f32 %v207_v26, 0.0  ;;  %v272_v43 = vmax.f32 %v208_v30, 0.0  ;;  %v273_v44 = vmax.f32 %v209_v31, 0.0 }
  0x76   :  { %v274_v45 = vmax.f32 %v210_v32, 0.0 }
  0x79   :  { %v69_v15 = vld [vmem:[%s896_s0 + $0x1b8] sm:$0xff] }
  0x7a   :  { %325 = vst [vmem:[%s899_s3 + $0x148] sm:$0xff] %v261_v4  ;;  %326 = vst [vmem:[%s899_s3 + $0x150] sm:$0xff] %v262_v5  ;;  %v140_v27 = vmul.f32 %v380_v1, %v69_v15 }
  0x7b   :  { %327 = vst [vmem:[%s899_s3 + $0x158] sm:$0xff] %v263_v6  ;;  %328 = vst [vmem:[%s899_s3 + $0x160] sm:$0xff] %v264_v11 }
  0x7c   :  { %329 = vst [vmem:[%s899_s3 + $0x168] sm:$0xff] %v265_v12  ;;  %330 = vst [vmem:[%s899_s3 + $0x170] sm:$0xff] %v266_v13  ;;  %v211_v39 = vadd.f32 %v385_v2, %v140_v27 }
  0x7d   :  { %331 = vst [vmem:[%s899_s3 + $0x178] sm:$0xff] %v267_v16 }
  0x7e   :  { %v275_v48 = vmax.f32 %v211_v39, 0.0 }
  0x84   :  { %v70_v28 = vld [vmem:[%s896_s0 + $0x1c0] sm:$0xff]  ;;  %v71_v33 = vld [vmem:[%s896_s0 + $0x1c8] sm:$0xff]  ;;  %v72_v34 = vld [vmem:[%s896_s0 + $0x1d0] sm:$0xff] }
  0x85   :  { %v73_v35 = vld [vmem:[%s896_s0 + $0x1d8] sm:$0xff]  ;;  %v74_v40 = vld [vmem:[%s896_s0 + $0x1e0] sm:$0xff]  ;;  %v75_v41 = vld [vmem:[%s896_s0 + $0x1e8] sm:$0xff]  ;;  %v141_v46 = vmul.f32 %v380_v1, %v70_v28  ;;  %v142_v49 = vmul.f32 %v380_v1, %v71_v33  ;;  %v143_v50 = vmul.f32 %v380_v1, %v72_v34 }
  0x86   :  { %v76_v42 = vld [vmem:[%s896_s0 + $0x1f0] sm:$0xff]  ;;  %v144_v51 = vmul.f32 %v380_v1, %v73_v35  ;;  %v145_v53 = vmul.f32 %v380_v1, %v74_v40  ;;  %v146_v54 = vmul.f32 %v380_v1, %v75_v41 }
  0x87   :  { %332 = vst [vmem:[%s899_s3 + $0x180] sm:$0xff] %v268_v29  ;;  %v212_v52 = vadd.f32 %v385_v2, %v141_v46  ;;  %v147_v55 = vmul.f32 %v380_v1, %v76_v42  ;;  %v213_v56 = vadd.f32 %v385_v2, %v142_v49  ;;  %v214_v57 = vadd.f32 %v385_v2, %v143_v50 }
  0x88   :  { %v215_v58 = vadd.f32 %v385_v2, %v144_v51  ;;  %v216_v61 = vadd.f32 %v385_v2, %v145_v53  ;;  %v217_v62 = vadd.f32 %v385_v2, %v146_v54 }
  0x89   :  { %v276_v60 = vmax.f32 %v212_v52, 0.0  ;;  %v218_v63 = vadd.f32 %v385_v2, %v147_v55  ;;  %v277_v0 = vmax.f32 %v213_v56, 0.0  ;;  %v278_v3 = vmax.f32 %v214_v57, 0.0 }
  0x8a   :  { %v279_v4 = vmax.f32 %v215_v58, 0.0  ;;  %v280_v6 = vmax.f32 %v216_v61, 0.0  ;;  %v281_v7 = vmax.f32 %v217_v62, 0.0 }
  0x8b   :  { %v282_v8 = vmax.f32 %v218_v63, 0.0 }
  0x8e   :  { %v77_v47 = vld [vmem:[%s896_s0 + $0x1f8] sm:$0xff] }
  0x8f   :  { %333 = vst [vmem:[%s899_s3 + $0x188] sm:$0xff] %v269_v36  ;;  %334 = vst [vmem:[%s899_s3 + $0x190] sm:$0xff] %v270_v37  ;;  %v148_v59 = vmul.f32 %v380_v1, %v77_v47 }
  0x90   :  { %335 = vst [vmem:[%s899_s3 + $0x198] sm:$0xff] %v271_v38  ;;  %336 = vst [vmem:[%s899_s3 + $0x1a0] sm:$0xff] %v272_v43 }
  0x91   :  { %337 = vst [vmem:[%s899_s3 + $0x1a8] sm:$0xff] %v273_v44  ;;  %338 = vst [vmem:[%s899_s3 + $0x1b0] sm:$0xff] %v274_v45  ;;  %v219_v5 = vadd.f32 %v385_v2, %v148_v59 }
  0x92   :  { %339 = vst [vmem:[%s899_s3 + $0x1b8] sm:$0xff] %v275_v48  ;;  %340 = vst [vmem:[%s899_s3 + $0x1c0] sm:$0xff] %v276_v60 }
  0x93   :  { %341 = vst [vmem:[%s899_s3 + $0x1c8] sm:$0xff] %v277_v0  ;;  %342 = vst [vmem:[%s899_s3 + $0x1d0] sm:$0xff] %v278_v3  ;;  %v283_v1 = vmax.f32 %v219_v5, 0.0 }
  0x94   :  { %343 = vst [vmem:[%s899_s3 + $0x1d8] sm:$0xff] %v279_v4  ;;  %344 = vst [vmem:[%s899_s3 + $0x1e0] sm:$0xff] %v280_v6 }
  0x95   :  { %345 = vst [vmem:[%s899_s3 + $0x1e8] sm:$0xff] %v281_v7  ;;  %346 = vst [vmem:[%s899_s3 + $0x1f0] sm:$0xff] %v282_v8 }
  0x96   :  { %347 = vst [vmem:[%s899_s3 + $0x1f8] sm:$0xff] %v283_v1 }

// kernel: double_conv2d.4
= control target key start
LH: loop header
LB: loop body
LE: loop exit
PB: predicated region body
PF: predicated region fallthrough
CT: control target
= control target key end

     0   :  { %s3196_s12 = smov 0   ;;  %s3198_s13 = smov 0   ;;  %s3941_s0 = inlined_call_operand.vmem [shape: f32[2,18,18,8], index: 0, kind: input, shape index: {}]   ;;  %s3942_s1 = inlined_call_operand.vmem [shape: f32[9,8,128], index: 1, kind: input, shape index: {}]   ;;  %s3943_s2 = inlined_call_operand.vmem [shape: f32[512,128], index: 2, kind: output, shape index: {0}]   ;;  %s3944_s3 = inlined_call_operand.vmem [shape: f32[4,8,128], index: 3, kind: output, shape index: {1}]  }
   0x1   :  { %s3200_s14 = smov 0   ;;  %s3202_s15 = smov 0  }
   0x2   :  { %s3204_s16 = smov 0  }
   0x3 LB: > { %s23_s17 = sadd.s32 1, %s3166_s14  ;;  %s26_s18 = sadd.s32 1, %s3170_s15  ;;  %s3174_s16 = sphi %s3204_s16, %s14_s16   ;;  %s3170_s15 = sphi %s3202_s15, %s3984_s15   ;;  %s3166_s14 = sphi %s3200_s14, %s3983_s14   ;;  %s3162_s13 = sphi %s3198_s13, %s3982_s13   ;;  %s3158_s12 = sphi %s3196_s12, %s3981_s12  }
   0x4   : > { %p24_p0 = scmp.ge.s32.totalorder %s23_s17, 2  ;;  %p2443_p1 = scmp.ge.s32.totalorder %s3174_s16, 1 }
   0x5   : > { %p160_p2 = scmp.lt.s32.totalorder %s3174_s16, 5 }
   0x6   : > { %s3986_s17 = smov (%p24_p0, %s23_s17), 0  ;;  %s3988_s18 = smov (!%p24_p0, %s26_s18), %s3170_s15 }
   0x7   : > { %p161_p3 = pnand %p2443_p1, %p160_p2  ;;  %p28_p4 = scmp.ge.s32.totalorder %s3988_s18, 2 }
   0x9   : > { %s3990_s18 = smov (%p28_p4, %s3988_s18), 0  ;;  %164 = sbr.rel (%p161_p3) target bundleno = 386 (0x182), region = 28 }
   0xe   : > { %v2452_v0 = vld [vmem:[%s3942_s1 + $0x8] sm:$0xff]  ;;  %p192_p5 = scmp.lt.s32.totalorder %s3162_s13, 1  ;;  %v234_v1 = vld [vmem:[%s3942_s1] sm:$0xff]  ;;  %v2485_v2 = vld [vmem:[%s3942_s1 + $0x10] sm:$0xff]  ;;  %s2451_s26 = smul.u32 192, %s3158_s12  ;;  %vm253_vm0 = vcmask 64512  }
   0xf   : > { %3093 = vmatprep.subr.mxu1 %v2452_v0  ;;  %2859 = vmatprep.subr.mxu0 %v2452_v0  ;;  %v2520_v9 = vld [vmem:[%s3942_s1 + $0x18] sm:$0xff]  ;;  %v2553_v10 = vld [vmem:[%s3942_s1 + $0x20] sm:$0xff]  ;;  %v3344_v27 = vld [vmem:[%s3942_s1 + $0x28] sm:$0xff]  ;;  %s2445_s24 = sshll.u32 %s3162_s13, 1  ;;  %vm2309_vm1 = vcmask 1040384   ;;  %vm2311_vm2 = vcmask 1041408  }
  0x10   : > { %3094 = vmatpush3.msra.mxu1 %v2452_v0  ;;  %2860 = vmatpush3.msra.mxu0 %v2452_v0  ;;  %s193_s25 = scalar_select %p192_p5, %s3162_s13, 1  ;;  %v3349_v28 = vld [vmem:[%s3942_s1 + $0x30] sm:$0xff]  ;;  %v2654_v55 = vld [vmem:[%s3942_s1 + $0x38] sm:$0xff]  ;;  %v2687_v56 = vld [vmem:[%s3942_s1 + $0x40] sm:$0xff] }
  0x11   : > { %2885 = vmatprep.subr.mxu1 %v234_v1  ;;  %2911 = vmatprep.subr.mxu0 %v2485_v2 }
  0x12   : > { %s3095_s27 = smul.u32 432, %s193_s25  ;;  %s3800_s25 = sadd.s32 %s3158_s12, %s2445_s24 }
  0x13   : > { %p209_p7 = scmp.lt.s32.totalorder %s3800_s25, 3 }
  0x14   : > { %s196_s30 = scalar_lea.vmem %s3941_s0, %s3095_s27 }
  0x15   : > { %s3245_s4 = scalar_lea.vmem %s196_s30, %s2451_s26  ;;  %s2446_s26 = sshll.u32 %s3800_s25, 4 }
  0x16   : > { %v235_v3 = vld [vmem:[%s3245_s4 + $0x1] sm:$0xff]  ;;  %v236_v5 = vld [vmem:[%s3245_s4 + $0x9] sm:$0xff]  ;;  %v3259_v7 = vld [vmem:[%s3245_s4 + $0x19] sm:$0xff]  ;;  %p200_p6 = scmp.lt.s32.totalorder %s2446_s26, 63  ;;  %s3994_s25 = smov (!%p209_p7, %s3800_s25), 3 }
  0x17   : > { %v3249_v4 = vld [vmem:[%s3245_s4 + $0x61] sm:$0xff]  ;;  %2861 = vmatprep.mubr.msk.f32.mxu0 %vm253_vm0, %v235_v3  ;;  %v3256_v6 = vld [vmem:[%s3245_s4 + $0x69] sm:$0xff]  ;;  %v3262_v8 = vld [vmem:[%s3245_s4 + $0x79] sm:$0xff]  ;;  %s2449_s29 = sshll.u32 %s3994_s25, 3 }
  0x18   : > { %2873 = vmatprep.mubr.msk.f32.mxu1 %vm253_vm0, %v3249_v4  ;;  %2862 = vmatmul.mubr.msk.f32.vlgmr.msra.gmra.mxu0 %vm253_vm0, %v236_v5  ;;  %v3274_v11 = vld [vmem:[%s3245_s4 + $0x21] sm:$0xff]  ;;  %v3284_v13 = vld [vmem:[%s3245_s4 + $0x31] sm:$0xff]  ;;  %v3298_v15 = vld [vmem:[%s3245_s4 + $0x39] sm:$0xff]  ;;  %s3992_s26 = smov (!%p200_p6, %s2446_s26), 63  ;;  %s212_s5 = scalar_lea.vmem %s3944_s3, %s2449_s29 }
  0x19   : > { %2874 = vmatmul.mubr.msk.f32.vlgmr.msra.gmra.mxu1 %vm253_vm0, %v3256_v6  ;;  %2912 = vmatpush3.msra.mxu0 %v2485_v2  ;;  %v3277_v12 = vld [vmem:[%s3245_s4 + $0x81] sm:$0xff]  ;;  %v3287_v14 = vld [vmem:[%s3245_s4 + $0x91] sm:$0xff]  ;;  %v3301_v16 = vld [vmem:[%s3245_s4 + $0x99] sm:$0xff]  ;;  %s2447_s12 = sshll.u32 %s3992_s26, 3 }
  0x1a   : > { %2886 = vmatpush3.msra.mxu1 %v234_v1  ;;  %2864 = vmatprep.mubr.msk.f32.mxu0 %vm253_vm0, %v3259_v7  ;;  %v3304_v17 = vld [vmem:[%s3245_s4 + $0x49] sm:$0xff]  ;;  %v3318_v19 = vld [vmem:[%s3245_s4 + $0x51] sm:$0xff]  ;;  %v218_v21 = vld [vmem:[%s3245_s4] sm:$0xff]  ;;  %s3854_s28 = scalar_lea.vmem %s3943_s2, %s2447_s12 }
  0x1b   : > { %2876 = vmatprep.mubr.msk.f32.mxu1 %vm253_vm0, %v3262_v8  ;;  %2937 = vmatprep.subr.mxu1 %v2520_v9  ;;  %v3307_v18 = vld [vmem:[%s3245_s4 + $0xa9] sm:$0xff]  ;;  %v3321_v20 = vld [vmem:[%s3245_s4 + $0xb1] sm:$0xff]  ;;  %v3337_v26 = vld [vmem:[%s3245_s4 + $0x1a] sm:$0xff] }
  0x1c   : > { %2963 = vmatprep.subr.mxu0 %v2553_v10  ;;  %2865 = vmatmul.mubr.msk.f32.gmra.mxu0 %vm253_vm0, %v3274_v11  ;;  %v640_v22 = vld [vmem:[%s3245_s4 + $0x2] sm:$0xff]  ;;  %v641_v24 = vld [vmem:[%s3245_s4 + $0xa] sm:$0xff]  ;;  %v3334_v25 = vld [vmem:[%s3245_s4 + $0x18] sm:$0xff] }
  0x1d   : > { %2877 = vmatmul.mubr.msk.f32.gmra.mxu1 %vm253_vm0, %v3277_v12  ;;  %2867 = vmatprep.mubr.msk.f32.mxu0 %vm253_vm0, %v3284_v13  ;;  %v219_v23 = vld [vmem:[%s3245_s4 + $0x8] sm:$0xff]  ;;  %v221_v29 = vld [vmem:[%s3245_s4 + $0x20] sm:$0xff]  ;;  %v3360_v31 = vld [vmem:[%s3245_s4 + $0x30] sm:$0xff] }
  0x1e   : > { %2879 = vmatprep.mubr.msk.f32.mxu1 %vm253_vm0, %v3287_v14  ;;  %v3353_v30 = vld [vmem:[%s3245_s4 + $0x22] sm:$0xff]  ;;  %v3363_v32 = vld [vmem:[%s3245_s4 + $0x32] sm:$0xff]  ;;  %v3378_v34 = vld [vmem:[%s3245_s4 + $0x3a] sm:$0xff] }
  0x1f   : > { %v3375_v33 = vld [vmem:[%s3245_s4 + $0x38] sm:$0xff]  ;;  %v3381_v35 = vld [vmem:[%s3245_s4 + $0x48] sm:$0xff]  ;;  %v3395_v37 = vld [vmem:[%s3245_s4 + $0x50] sm:$0xff] }
  0x20   : > { %2868 = vmatmul.mubr.msk.f32.gmra.mxu0 %vm253_vm0, %v3298_v15  ;;  %v3384_v36 = vld [vmem:[%s3245_s4 + $0x4a] sm:$0xff]  ;;  %v3398_v38 = vld [vmem:[%s3245_s4 + $0x52] sm:$0xff]  ;;  %v3401_v39 = vld [vmem:[%s3245_s4 + $0x60] sm:$0xff] }
  0x21   : > { %2880 = vmatmul.mubr.msk.f32.gmra.mxu1 %vm253_vm0, %v3301_v16  ;;  %2870 = vmatprep.mubr.msk.f32.mxu0 %vm253_vm0, %v3304_v17  ;;  %v3404_v40 = vld [vmem:[%s3245_s4 + $0x62] sm:$0xff]  ;;  %v3418_v42 = vld [vmem:[%s3245_s4 + $0x6a] sm:$0xff]  ;;  %v3421_v43 = vld [vmem:[%s3245_s4 + $0x78] sm:$0xff] }
  0x22   : > { %2882 = vmatprep.mubr.msk.f32.mxu1 %vm253_vm0, %v3307_v18  ;;  %v3415_v41 = vld [vmem:[%s3245_s4 + $0x68] sm:$0xff]  ;;  %v3424_v44 = vld [vmem:[%s3245_s4 + $0x7a] sm:$0xff]  ;;  %v3441_v47 = vld [vmem:[%s3245_s4 + $0x90] sm:$0xff] }
  0x23   : > { %v3435_v45 = vld [vmem:[%s3245_s4 + $0x80] sm:$0xff]  ;;  %v3444_v48 = vld [vmem:[%s3245_s4 + $0x92] sm:$0xff]  ;;  %v3461_v51 = vld [vmem:[%s3245_s4 + $0xa8] sm:$0xff] }
  0x24   : > { %2871 = vmatmul.mubr.msk.f32.gmra.mxu0 %vm253_vm0, %v3318_v19  ;;  %v3438_v46 = vld [vmem:[%s3245_s4 + $0x82] sm:$0xff]  ;;  %v3455_v49 = vld [vmem:[%s3245_s4 + $0x98] sm:$0xff]  ;;  %v3464_v52 = vld [vmem:[%s3245_s4 + $0xaa] sm:$0xff] }
  0x25   : > { %2883 = vmatmul.mubr.msk.f32.gmra.mxu1 %vm253_vm0, %v3321_v20  ;;  %2913 = vmatprep.mubr.msk.f32.mxu0 %vm253_vm0, %v640_v22  ;;  %v3458_v50 = vld [vmem:[%s3245_s4 + $0x9a] sm:$0xff]  ;;  %v3475_v53 = vld [vmem:[%s3245_s4 + $0xb0] sm:$0xff]  ;;  %v2519_v59 = vld [vmem:[%s3245_s4 + $0xc8] sm:$0xff] }
  0x26   : > { %2887 = vmatprep.mubr.msk.f32.mxu1 %vm253_vm0, %v218_v21  ;;  %v3478_v54 = vld [vmem:[%s3245_s4 + $0xb2] sm:$0xff]  ;;  %v2518_v57 = vld [vmem:[%s3245_s4 + $0xc0] sm:$0xff]  ;;  %v3556_v60 = vld [vmem:[%s3245_s4 + $0xc9] sm:$0xff] }
  0x27   : > { %v3545_v58 = vld [vmem:[%s3245_s4 + $0xc1] sm:$0xff]  ;;  %v2619_v62 = vld [vmem:[%s3245_s4 + $0xd8] sm:$0xff]  ;;  %v2585_v63 = vld [vmem:[%s3245_s4 + $0xca] sm:$0xff] }
  0x28   : > { %2914 = vmatmul.mubr.msk.f32.vlgmr.msra.gmra.mxu0 %vm253_vm0, %v641_v24  ;;  %v2584_v61 = vld [vmem:[%s3245_s4 + $0xc2] sm:$0xff]  ;;  %v2652_v1 = vld [vmem:[%s3245_s4 + $0xd9] sm:$0xff] }
  0x29   : > { %2888 = vmatmul.mubr.msk.f32.vlgmr.msra.gmra.mxu1 %vm253_vm0, %v219_v23  ;;  %2964 = vmatpush3.msra.mxu0 %v2553_v10  ;;  %v2620_v0 = vld [vmem:[%s3245_s4 + $0xe0] sm:$0xff] }
  0x2a   : > { %2938 = vmatpush3.msra.mxu1 %v2520_v9  ;;  %2890 = vmatprep.mubr.msk.f32.mxu1 %vm253_vm0, %v3334_v25  ;;  %v2685_v2 = vld [vmem:[%s3245_s4 + $0xda] sm:$0xff] }
  0x2b   : > { %2916 = vmatprep.mubr.msk.f32.mxu0 %vm253_vm0, %v3337_v26  ;;  %2989 = vmatprep.subr.mxu1 %v3344_v27  ;;  %v2653_v3 = vld [vmem:[%s3245_s4 + $0xe1] sm:$0xff] }
  0x2c   : > { %3015 = vmatprep.subr.mxu0 %v3349_v28  ;;  %2917 = vmatmul.mubr.msk.f32.gmra.mxu0 %vm253_vm0, %v3353_v30 }
  0x2d   : > { %2891 = vmatmul.mubr.msk.f32.gmra.mxu1 %vm253_vm0, %v221_v29  ;;  %2919 = vmatprep.mubr.msk.f32.mxu0 %vm253_vm0, %v3363_v32 }
  0x2e   : > { %2893 = vmatprep.mubr.msk.f32.mxu1 %vm253_vm0, %v3360_v31 }
  0x30   : > { %2920 = vmatmul.mubr.msk.f32.gmra.mxu0 %vm253_vm0, %v3378_v34 }
  0x31   : > { %2894 = vmatmul.mubr.msk.f32.gmra.mxu1 %vm253_vm0, %v3375_v33  ;;  %2922 = vmatprep.mubr.msk.f32.mxu0 %vm253_vm0, %v3384_v36 }
  0x32   : > { %2896 = vmatprep.mubr.msk.f32.mxu1 %vm253_vm0, %v3381_v35 }
  0x34   : > { %2923 = vmatmul.mubr.msk.f32.gmra.mxu0 %vm253_vm0, %v3398_v38 }
  0x35   : > { %2897 = vmatmul.mubr.msk.f32.gmra.mxu1 %vm253_vm0, %v3395_v37  ;;  %2925 = vmatprep.mubr.msk.f32.mxu0 %vm253_vm0, %v3404_v40 }
  0x36   : > { %2899 = vmatprep.mubr.msk.f32.mxu1 %vm253_vm0, %v3401_v39 }
  0x38   : > { %2926 = vmatmul.mubr.msk.f32.gmra.mxu0 %vm253_vm0, %v3418_v42 }
  0x39   : > { %2900 = vmatmul.mubr.msk.f32.gmra.mxu1 %vm253_vm0, %v3415_v41  ;;  %2928 = vmatprep.mubr.msk.f32.mxu0 %vm253_vm0, %v3424_v44 }
  0x3a   : > { %2902 = vmatprep.mubr.msk.f32.mxu1 %vm253_vm0, %v3421_v43 }
  0x3c   : > { %2929 = vmatmul.mubr.msk.f32.gmra.mxu0 %vm253_vm0, %v3438_v46 }
  0x3d   : > { %2903 = vmatmul.mubr.msk.f32.gmra.mxu1 %vm253_vm0, %v3435_v45  ;;  %2931 = vmatprep.mubr.msk.f32.mxu0 %vm253_vm0, %v3444_v48 }
  0x3e   : > { %2905 = vmatprep.mubr.msk.f32.mxu1 %vm253_vm0, %v3441_v47 }
  0x40   : > { %2932 = vmatmul.mubr.msk.f32.gmra.mxu0 %vm253_vm0, %v3458_v50 }
  0x41   : > { %2906 = vmatmul.mubr.msk.f32.gmra.mxu1 %vm253_vm0, %v3455_v49  ;;  %2934 = vmatprep.mubr.msk.f32.mxu0 %vm253_vm0, %v3464_v52 }
  0x42   : > { %2908 = vmatprep.mubr.msk.f32.mxu1 %vm253_vm0, %v3461_v51 }
  0x44   : > { %2935 = vmatmul.mubr.msk.f32.gmra.mxu0 %vm253_vm0, %v3478_v54 }
  0x45   : > { %2909 = vmatmul.mubr.msk.f32.gmra.mxu1 %vm253_vm0, %v3475_v53  ;;  %2965 = vmatprep.mubr.msk.f32.mxu0 %vm253_vm0, %v3259_v7 }
  0x46   : > { %2939 = vmatprep.mubr.msk.f32.mxu1 %vm253_vm0, %v3334_v25 }
  0x48   : > { %2966 = vmatmul.mubr.msk.f32.vlgmr.msra.gmra.mxu0 %vm253_vm0, %v3274_v11 }
  0x49   : > { %2940 = vmatmul.mubr.msk.f32.vlgmr.msra.gmra.mxu1 %vm253_vm0, %v221_v29  ;;  %3016 = vmatpush3.msra.mxu0 %v3349_v28 }
  0x4a   : > { %2990 = vmatpush3.msra.mxu1 %v3344_v27  ;;  %2942 = vmatprep.mubr.msk.f32.mxu1 %vm253_vm0, %v3360_v31 }
  0x4b   : > { %2968 = vmatprep.mubr.msk.f32.mxu0 %vm253_vm0, %v3284_v13  ;;  %3041 = vmatprep.subr.mxu1 %v2654_v55 }
  0x4c   : > { %3067 = vmatprep.subr.mxu0 %v2687_v56  ;;  %2969 = vmatmul.mubr.msk.f32.gmra.mxu0 %vm253_vm0, %v3298_v15 }
  0x4d   : > { %2943 = vmatmul.mubr.msk.f32.gmra.mxu1 %vm253_vm0, %v3375_v33  ;;  %2971 = vmatprep.mubr.msk.f32.mxu0 %vm253_vm0, %v3304_v17 }
  0x4e   : > { %2945 = vmatprep.mubr.msk.f32.mxu1 %vm253_vm0, %v3381_v35 }
  0x50   : > { %2972 = vmatmul.mubr.msk.f32.gmra.mxu0 %vm253_vm0, %v3318_v19 }
  0x51   : > { %2946 = vmatmul.mubr.msk.f32.gmra.mxu1 %vm253_vm0, %v3395_v37  ;;  %2974 = vmatprep.mubr.msk.f32.mxu0 %vm253_vm0, %v3249_v4 }
  0x52   : > { %2948 = vmatprep.mubr.msk.f32.mxu1 %vm253_vm0, %v3401_v39 }
  0x54   : > { %2975 = vmatmul.mubr.msk.f32.gmra.mxu0 %vm253_vm0, %v3256_v6 }
  0x55   : > { %2949 = vmatmul.mubr.msk.f32.gmra.mxu1 %vm253_vm0, %v3415_v41  ;;  %2977 = vmatprep.mubr.msk.f32.mxu0 %vm253_vm0, %v3262_v8 }
  0x56   : > { %2951 = vmatprep.mubr.msk.f32.mxu1 %vm253_vm0, %v3421_v43 }
  0x58   : > { %2978 = vmatmul.mubr.msk.f32.gmra.mxu0 %vm253_vm0, %v3277_v12 }
  0x59   : > { %2952 = vmatmul.mubr.msk.f32.gmra.mxu1 %vm253_vm0, %v3435_v45  ;;  %2980 = vmatprep.mubr.msk.f32.mxu0 %vm253_vm0, %v3287_v14 }
  0x5a   : > { %2954 = vmatprep.mubr.msk.f32.mxu1 %vm253_vm0, %v3441_v47 }
  0x5c   : > { %2981 = vmatmul.mubr.msk.f32.gmra.mxu0 %vm253_vm0, %v3301_v16 }
  0x5d   : > { %2955 = vmatmul.mubr.msk.f32.gmra.mxu1 %vm253_vm0, %v3455_v49  ;;  %2983 = vmatprep.mubr.msk.f32.mxu0 %vm253_vm0, %v3307_v18 }
  0x5e   : > { %2957 = vmatprep.mubr.msk.f32.mxu1 %vm253_vm0, %v3461_v51 }
  0x60   : > { %2984 = vmatmul.mubr.msk.f32.gmra.mxu0 %vm253_vm0, %v3321_v20 }
  0x61   : > { %2958 = vmatmul.mubr.msk.f32.gmra.mxu1 %vm253_vm0, %v3475_v53  ;;  %2986 = vmatprep.mubr.msk.f32.mxu0 %vm253_vm0, %v3545_v58 }
  0x62   : > { %2960 = vmatprep.mubr.msk.f32.mxu1 %vm253_vm0, %v2518_v57 }
  0x64   : > { %2987 = vmatmul.mubr.msk.f32.gmra.mxu0 %vm253_vm0, %v3556_v60 }
  0x65   : > { %2961 = vmatmul.mubr.msk.f32.gmra.mxu1 %vm253_vm0, %v2519_v59  ;;  %3017 = vmatprep.mubr.msk.f32.mxu0 %vm253_vm0, %v3360_v31 }
  0x66   : > { %2991 = vmatprep.mubr.msk.f32.mxu1 %vm253_vm0, %v3337_v26 }
  0x68   : > { %3018 = vmatmul.mubr.msk.f32.vlgmr.msra.gmra.mxu0 %vm253_vm0, %v3375_v33 }
  0x69   : > { %2992 = vmatmul.mubr.msk.f32.vlgmr.msra.gmra.mxu1 %vm253_vm0, %v3353_v30  ;;  %3068 = vmatpush3.msra.mxu0 %v2687_v56 }
  0x6a   : > { %3042 = vmatpush3.msra.mxu1 %v2654_v55  ;;  %2994 = vmatprep.mubr.msk.f32.mxu1 %vm253_vm0, %v3363_v32 }
  0x6b   : > { %3020 = vmatprep.mubr.msk.f32.mxu0 %vm253_vm0, %v3381_v35 }
  0x6c   : > { %3021 = vmatmul.mubr.msk.f32.gmra.mxu0 %vm253_vm0, %v3395_v37 }
  0x6d   : > { %2995 = vmatmul.mubr.msk.f32.gmra.mxu1 %vm253_vm0, %v3378_v34  ;;  %3023 = vmatprep.mubr.msk.f32.mxu0 %vm253_vm0, %v3401_v39 }
  0x6e   : > { %2997 = vmatprep.mubr.msk.f32.mxu1 %vm253_vm0, %v3384_v36 }
  0x70   : > { %3024 = vmatmul.mubr.msk.f32.gmra.mxu0 %vm253_vm0, %v3415_v41 }
  0x71   : > { %2998 = vmatmul.mubr.msk.f32.gmra.mxu1 %vm253_vm0, %v3398_v38  ;;  %3026 = vmatprep.mubr.msk.f32.mxu0 %vm253_vm0, %v3421_v43 }
  0x72   : > { %3000 = vmatprep.mubr.msk.f32.mxu1 %vm253_vm0, %v3404_v40 }
  0x74   : > { %3027 = vmatmul.mubr.msk.f32.gmra.mxu0 %vm253_vm0, %v3435_v45 }
  0x75   : > { %3001 = vmatmul.mubr.msk.f32.gmra.mxu1 %vm253_vm0, %v3418_v42  ;;  %3029 = vmatprep.mubr.msk.f32.mxu0 %vm253_vm0, %v3441_v47 }
  0x76   : > { %3003 = vmatprep.mubr.msk.f32.mxu1 %vm253_vm0, %v3424_v44 }
  0x78   : > { %3030 = vmatmul.mubr.msk.f32.gmra.mxu0 %vm253_vm0, %v3455_v49 }
  0x79   : > { %3004 = vmatmul.mubr.msk.f32.gmra.mxu1 %vm253_vm0, %v3438_v46  ;;  %3032 = vmatprep.mubr.msk.f32.mxu0 %vm253_vm0, %v3461_v51 }
  0x7a   : > { %3006 = vmatprep.mubr.msk.f32.mxu1 %vm253_vm0, %v3444_v48 }
  0x7c   : > { %3033 = vmatmul.mubr.msk.f32.gmra.mxu0 %vm253_vm0, %v3475_v53 }
  0x7d   : > { %3007 = vmatmul.mubr.msk.f32.gmra.mxu1 %vm253_vm0, %v3458_v50  ;;  %3035 = vmatprep.mubr.msk.f32.mxu0 %vm253_vm0, %v2518_v57 }
  0x7e   : > { %3009 = vmatprep.mubr.msk.f32.mxu1 %vm253_vm0, %v3464_v52 }
  0x80   : > { %3036 = vmatmul.mubr.msk.f32.gmra.mxu0 %vm253_vm0, %v2519_v59 }
  0x81   : > { %3010 = vmatmul.mubr.msk.f32.gmra.mxu1 %vm253_vm0, %v3478_v54  ;;  %3038 = vmatprep.mubr.msk.f32.mxu0 %vm253_vm0, %v2619_v62 }
  0x82   : > { %3012 = vmatprep.mubr.msk.f32.mxu1 %vm253_vm0, %v2584_v61 }
  0x84   : > { %3039 = vmatmul.mubr.msk.f32.gmra.mxu0 %vm253_vm0, %v2620_v0 }
  0x85   : > { %3013 = vmatmul.mubr.msk.f32.gmra.mxu1 %vm253_vm0, %v2585_v63  ;;  %3069 = vmatprep.mubr.msk.f32.mxu0 %vm253_vm0, %v3363_v32 }
  0x86   : > { %3043 = vmatprep.mubr.msk.f32.mxu1 %vm253_vm0, %v3284_v13 }
  0x88   : > { %3070 = vmatmul.mubr.msk.f32.vlgmr.msra.gmra.mxu0 %vm253_vm0, %v3378_v34 }
  0x89   : > { %3044 = vmatmul.mubr.msk.f32.vlgmr.msra.gmra.mxu1 %vm253_vm0, %v3298_v15  ;;  %3072 = vmatprep.mubr.msk.f32.mxu0 %vm253_vm0, %v3384_v36 }
  0x8a   : > { %3046 = vmatprep.mubr.msk.f32.mxu1 %vm253_vm0, %v3304_v17 }
  0x8c   : > { %3073 = vmatmul.mubr.msk.f32.gmra.mxu0 %vm253_vm0, %v3398_v38 }
  0x8d   : > { %3047 = vmatmul.mubr.msk.f32.gmra.mxu1 %vm253_vm0, %v3318_v19  ;;  %3075 = vmatprep.mubr.msk.f32.mxu0 %vm253_vm0, %v3404_v40 }
  0x8e   : > { %3049 = vmatprep.mubr.msk.f32.mxu1 %vm253_vm0, %v3249_v4  ;;  %v2686_v4 = vld [vmem:[%s3245_s4 + $0xe2] sm:$0xff] }
  0x90   : > { %3076 = vmatmul.mubr.msk.f32.gmra.mxu0 %vm253_vm0, %v3418_v42 }
  0x91   : > { %3050 = vmatmul.mubr.msk.f32.gmra.mxu1 %vm253_vm0, %v3256_v6  ;;  %3078 = vmatprep.mubr.msk.f32.mxu0 %vm253_vm0, %v3424_v44 }
  0x92   : > { %3052 = vmatprep.mubr.msk.f32.mxu1 %vm253_vm0, %v3262_v8 }
  0x94   : > { %3079 = vmatmul.mubr.msk.f32.gmra.mxu0 %vm253_vm0, %v3438_v46 }
  0x95   : > { %3053 = vmatmul.mubr.msk.f32.gmra.mxu1 %vm253_vm0, %v3277_v12  ;;  %3081 = vmatprep.mubr.msk.f32.mxu0 %vm253_vm0, %v3444_v48 }
  0x96   : > { %3055 = vmatprep.mubr.msk.f32.mxu1 %vm253_vm0, %v3287_v14 }
  0x98   : > { %3082 = vmatmul.mubr.msk.f32.gmra.mxu0 %vm253_vm0, %v3458_v50 }
  0x99   : > { %3056 = vmatmul.mubr.msk.f32.gmra.mxu1 %vm253_vm0, %v3301_v16  ;;  %3084 = vmatprep.mubr.msk.f32.mxu0 %vm253_vm0, %v3464_v52 }
  0x9a   : > { %3058 = vmatprep.mubr.msk.f32.mxu1 %vm253_vm0, %v3307_v18 }
  0x9c   : > { %3085 = vmatmul.mubr.msk.f32.gmra.mxu0 %vm253_vm0, %v3478_v54 }
  0x9d   : > { %3059 = vmatmul.mubr.msk.f32.gmra.mxu1 %vm253_vm0, %v3321_v20  ;;  %3087 = vmatprep.mubr.msk.f32.mxu0 %vm253_vm0, %v2584_v61 }
  0x9e   : > { %3061 = vmatprep.mubr.msk.f32.mxu1 %vm253_vm0, %v3545_v58 }
  0xa0   : > { %3088 = vmatmul.mubr.msk.f32.gmra.mxu0 %vm253_vm0, %v2585_v63 }
  0xa1   : > { %3062 = vmatmul.mubr.msk.f32.gmra.mxu1 %vm253_vm0, %v3556_v60  ;;  %3090 = vmatprep.mubr.msk.f32.mxu0 %vm253_vm0, %v2685_v2 }
  0xa2   : > { %3064 = vmatprep.mubr.msk.f32.mxu1 %vm253_vm0, %v2652_v1 }
  0xa4   : > { %3091 = vmatmul.mubr.msk.f32.gmra.mxu0 %vm253_vm0, %v2686_v4 }
  0xa5   : > { %3065 = vmatmul.mubr.msk.f32.gmra.mxu1 %vm253_vm0, %v2653_v3 }
  0xd8   : > { %v2863_v5 = vpop.f32.mrf.mxu0 }
  0xd9   : > { %v2875_v6 = vpop.f32.mrf.mxu1 }
  0xda   : > { %v368_v7 = vpop.f32.mrf.mxu0 }
  0xdb   : > { %v408_v8 = vpop.f32.mrf.mxu1 }
  0xdc   : > { %v2866_v9 = vpop.f32.mrf.mxu0 }
  0xdd   : > { %v2878_v10 = vpop.f32.mrf.mxu1 }
  0xde   : > { %v378_v11 = vpop.f32.mrf.mxu0 }
  0xdf   : > { %v418_v12 = vpop.f32.mrf.mxu1 }
  0xe0   : > { %v2869_v13 = vpop.f32.mrf.mxu0 }
  0xe1   : > { %v2881_v14 = vpop.f32.mrf.mxu1 }
  0xe2   : > { %v388_v15 = vpop.f32.mrf.mxu0 }
  0xe3   : > { %v428_v16 = vpop.f32.mrf.mxu1 }
  0xe4   : > { %v2872_v17 = vpop.f32.mrf.mxu0 }
  0xe5   : > { %v2884_v18 = vpop.f32.mrf.mxu1 }
  0xe6   : > { %v398_v19 = vpop.f32.mrf.mxu0 }
  0xe7   : > { %v3685_v20 = vpop.f32.mrf.mxu1 }
  0xe8   : > { %v2915_v22 = vpop.f32.mrf.mxu0 }
  0xe9   : > { %v2889_v21 = vpop.f32.mrf.mxu1 }
  0xea   : > { %v567_v23 = vadd.f32 %v2889_v21, %v2863_v5  ;;  %v772_v25 = vpop.f32.mrf.mxu0 }
  0xeb   : > { %v561_v24 = vpop.f32.mrf.mxu1 }
  0xec   : > { %v3687_v26 = vadd.f32 %v2915_v22, %v567_v23  ;;  %v562_v27 = vadd.f32 %v561_v24, %v368_v7  ;;  %v2918_v29 = vpop.f32.mrf.mxu0 }
  0xed   : > { %v2892_v28 = vpop.f32.mrf.mxu1 }
  0xee   : > { %v3689_v30 = vadd.f32 %v772_v25, %v562_v27  ;;  %v577_v31 = vadd.f32 %v2892_v28, %v2866_v9  ;;  %v782_v33 = vpop.f32.mrf.mxu0 }
  0xef   : > { %v571_v32 = vpop.f32.mrf.mxu1 }
  0xf0   : > { %v3691_v34 = vadd.f32 %v2918_v29, %v577_v31  ;;  %v572_v35 = vadd.f32 %v571_v32, %v378_v11  ;;  %v2921_v37 = vpop.f32.mrf.mxu0 }
  0xf1   : > { %v2895_v36 = vpop.f32.mrf.mxu1 }
  0xf2   : > { %v3693_v38 = vadd.f32 %v782_v33, %v572_v35  ;;  %v587_v39 = vadd.f32 %v2895_v36, %v2869_v13  ;;  %v792_v41 = vpop.f32.mrf.mxu0 }
  0xf3   : > { %v581_v40 = vpop.f32.mrf.mxu1 }
  0xf4   : > { %v3695_v42 = vadd.f32 %v2921_v37, %v587_v39  ;;  %v582_v43 = vadd.f32 %v581_v40, %v388_v15  ;;  %v2924_v45 = vpop.f32.mrf.mxu0 }
  0xf5   : > { %v2898_v44 = vpop.f32.mrf.mxu1 }
  0xf6   : > { %v3697_v46 = vadd.f32 %v792_v41, %v582_v43  ;;  %v597_v47 = vadd.f32 %v2898_v44, %v2872_v17  ;;  %v802_v49 = vpop.f32.mrf.mxu0 }
  0xf7   : > { %v591_v48 = vpop.f32.mrf.mxu1 }
  0xf8   : > { %v3699_v50 = vadd.f32 %v2924_v45, %v597_v47  ;;  %v592_v51 = vadd.f32 %v591_v48, %v398_v19  ;;  %v2927_v53 = vpop.f32.mrf.mxu0 }
  0xf9   : > { %v2901_v52 = vpop.f32.mrf.mxu1 }
  0xfa   : > { %v3701_v54 = vadd.f32 %v802_v49, %v592_v51  ;;  %v607_v55 = vadd.f32 %v2901_v52, %v2875_v6  ;;  %v812_v57 = vpop.f32.mrf.mxu0 }
  0xfb   : > { %v601_v56 = vpop.f32.mrf.mxu1 }
  0xfc   : > { %v3703_v58 = vadd.f32 %v2927_v53, %v607_v55  ;;  %v602_v59 = vadd.f32 %v601_v56, %v408_v8  ;;  %v2930_v61 = vpop.f32.mrf.mxu0 }
  0xfd   : > { %v2904_v60 = vpop.f32.mrf.mxu1 }
  0xfe   : > { %v3705_v62 = vadd.f32 %v812_v57, %v602_v59  ;;  %v617_v63 = vadd.f32 %v2904_v60, %v2878_v10  ;;  %v822_v1 = vpop.f32.mrf.mxu0 }
  0xff   : > { %v611_v0 = vpop.f32.mrf.mxu1 }
 0x100   : > { %v3707_v2 = vadd.f32 %v2930_v61, %v617_v63  ;;  %v612_v3 = vadd.f32 %v611_v0, %v418_v12  ;;  %v2933_v5 = vpop.f32.mrf.mxu0 }
 0x101   : > { %v2907_v4 = vpop.f32.mrf.mxu1 }
 0x102   : > { %v3709_v7 = vadd.f32 %v822_v1, %v612_v3  ;;  %v627_v6 = vadd.f32 %v2907_v4, %v2881_v14  ;;  %v832_v11 = vpop.f32.mrf.mxu0 }
 0x103   : > { %v621_v9 = vpop.f32.mrf.mxu1 }
 0x104   : > { %v3711_v13 = vadd.f32 %v2933_v5, %v627_v6  ;;  %v622_v8 = vadd.f32 %v621_v9, %v428_v16  ;;  %v2936_v17 = vpop.f32.mrf.mxu0 }
 0x105   : > { %v2910_v15 = vpop.f32.mrf.mxu1 }
 0x106   : > { %v3713_v19 = vadd.f32 %v832_v11, %v622_v8  ;;  %v637_v10 = vadd.f32 %v2910_v15, %v2884_v18  ;;  %v842_v22 = vpop.f32.mrf.mxu0 }
 0x107   : > { %v631_v21 = vpop.f32.mrf.mxu1 }
 0x108   : > { %v3715_v23 = vadd.f32 %v2936_v17, %v637_v10  ;;  %v632_v12 = vadd.f32 %v631_v21, %v3685_v20  ;;  %v3718_v25 = vpop.f32.mrf.mxu0 }
 0x109   : > { %v2941_v24 = vpop.f32.mrf.mxu1 }
 0x10a   : > { %3945 = vst [vmem:[#allocation2_spill] sm:$0xff] %v3715_v23  ;;  %v3720_v14 = vadd.f32 %v842_v22, %v632_v12  ;;  %v3722_v28 = vpop.f32.mrf.mxu0 }
 0x10b   : > { %v1002_v27 = vpop.f32.mrf.mxu1 }
 0x10c   : > { %3946 = vst [vmem:[#allocation3_spill] sm:$0xff] %v3720_v14  ;;  %v3724_v29 = vpop.f32.mrf.mxu0 }
 0x10d   : > { %v2944_v16 = vpop.f32.mrf.mxu1 }
 0x10e   : > { %v3728_v18 = vpop.f32.mrf.mxu0 }
 0x10f   : > { %v3726_v31 = vpop.f32.mrf.mxu1 }
 0x110   : > { %v3732_v33 = vpop.f32.mrf.mxu0 }
 0x111   : > { %v3730_v32 = vpop.f32.mrf.mxu1 }
 0x112   : > { %v3736_v35 = vpop.f32.mrf.mxu0 }
 0x113   : > { %v3734_v20 = vpop.f32.mrf.mxu1 }
 0x114   : > { %v3740_v37 = vpop.f32.mrf.mxu0 }
 0x115   : > { %v3738_v36 = vpop.f32.mrf.mxu1 }
 0x116   : > { %v3744_v40 = vpop.f32.mrf.mxu0 }
 0x117   : > { %v3742_v39 = vpop.f32.mrf.mxu1 }
 0x118   : > { %v3748_v43 = vpop.f32.mrf.mxu0 }
 0x119   : > { %v3746_v41 = vpop.f32.mrf.mxu1 }
 0x11a   : > { %v3752_v45 = vpop.f32.mrf.mxu0 }
 0x11b   : > { %v3750_v44 = vpop.f32.mrf.mxu1 }
 0x11c   : > { %v3756_v48 = vpop.f32.mrf.mxu0 }
 0x11d   : > { %v3754_v47 = vpop.f32.mrf.mxu1 }
 0x11e   : > { %v3760_v51 = vpop.f32.mrf.mxu0 }
 0x11f   : > { %v3758_v49 = vpop.f32.mrf.mxu1 }
 0x120   : > { %v3764_v53 = vpop.f32.mrf.mxu0 }
 0x121   : > { %v3762_v52 = vpop.f32.mrf.mxu1  ;;  %3947 = vst [vmem:[#allocation4_spill] sm:$0xff] %v3764_v53 }
 0x122   : > { %v3768_v56 = vpop.f32.mrf.mxu0 }
 0x123   : > { %v3766_v55 = vpop.f32.mrf.mxu1  ;;  %3948 = vst [vmem:[#allocation5_spill] sm:$0xff] %v3768_v56 }
 0x124   : > { %v3772_v59 = vpop.f32.mrf.mxu0 }
 0x125   : > { %v3770_v57 = vpop.f32.mrf.mxu1  ;;  %3950 = vst [vmem:[#allocation7_spill] sm:$0xff] %v3772_v59 }
 0x126   : > { %3949 = vst [vmem:[#allocation6_spill] sm:$0xff] %v3770_v57  ;;  %v3776_v61 = vpop.f32.mrf.mxu0 }
 0x127   : > { %v3774_v60 = vpop.f32.mrf.mxu1  ;;  %3952 = vst [vmem:[#allocation9_spill] sm:$0xff] %v3776_v61 }
 0x128   : > { %3951 = vst [vmem:[#allocation8_spill] sm:$0xff] %v3774_v60  ;;  %v3019_v0 = vpop.f32.mrf.mxu0 }
 0x129   : > { %v2993_v63 = vpop.f32.mrf.mxu1 }
 0x12a   : > { %v1686_v3 = vpop.f32.mrf.mxu0 }
 0x12b   : > { %v1456_v1 = vpop.f32.mrf.mxu1 }
 0x12c   : > { %v3022_v5 = vpop.f32.mrf.mxu0 }
 0x12d   : > { %v2996_v4 = vpop.f32.mrf.mxu1 }
 0x12e   : > { %v3778_v9 = vpop.f32.mrf.mxu0 }
 0x12f   : > { %v1466_v6 = vpop.f32.mrf.mxu1 }
 0x130   : > { %v3780_v8 = vpop.f32.mrf.mxu0 }
 0x131   : > { %v2999_v11 = vpop.f32.mrf.mxu1 }
 0x132   : > { %v3784_v17 = vpop.f32.mrf.mxu0 }
 0x133   : > { %v3782_v15 = vpop.f32.mrf.mxu1 }
 0x134   : > { %v3788_v21 = vpop.f32.mrf.mxu0 }
 0x135   : > { %v3786_v10 = vpop.f32.mrf.mxu1  ;;  %3953 = vst [vmem:[#allocation10_spill] sm:$0xff] %v3788_v21  ;;  %v1082_v21 = vadd.f32 %v2941_v24, %v3687_v26  ;;  %v1083_v24 = vadd.f32 %v3726_v31, %v3693_v38  ;;  %v1085_v38 = vadd.f32 %v3734_v20, %v3697_v46 }
 0x136   : > { %v3792_v12 = vpop.f32.mrf.mxu0 }
 0x137   : > { %v3790_v22 = vpop.f32.mrf.mxu1  ;;  %3954 = vst [vmem:[#allocation11_spill] sm:$0xff] %v3792_v12  ;;  %v1312_v20 = vadd.f32 %v3736_v35, %v1085_v38 }
 0x138   : > { %v3797_v59 = vpop.f32.mrf.mxu0 }
 0x139   : > { %v3795_v61 = vpop.f32.mrf.mxu1  ;;  %3956 = vst [vmem:[#allocation13_spill] sm:$0xff] %v3797_v59  ;;  %v1081_v59 = vadd.f32 %v1002_v27, %v3689_v30  ;;  %v1086_v30 = vadd.f32 %v3730_v32, %v3695_v42  ;;  %v1088_v32 = vadd.f32 %v3738_v36, %v3699_v50 }
 0x13a   : > { %3955 = vst [vmem:[#allocation12_spill] sm:$0xff] %v3795_v61  ;;  %v3804_v14 = vpop.f32.mrf.mxu0 }
 0x13b   : > { %v3802_v60 = vpop.f32.mrf.mxu1  ;;  %3958 = vst [vmem:[#allocation15_spill] sm:$0xff] %v3804_v14  ;;  %v1309_v14 = vadd.f32 %v3718_v25, %v1082_v21  ;;  %v1308_v26 = vadd.f32 %v3722_v28, %v1081_v59  ;;  %v1310_v28 = vadd.f32 %v3728_v18, %v1083_v24  ;;  %v1313_v42 = vadd.f32 %v3732_v33, %v1086_v30 }
 0x13c   : > { %3957 = vst [vmem:[#allocation14_spill] sm:$0xff] %v3802_v60  ;;  %v3808_v23 = vpop.f32.mrf.mxu0 }
 0x13d   : > { %v3806_v57 = vpop.f32.mrf.mxu1  ;;  %3960 = vst [vmem:[#allocation17_spill] sm:$0xff] %v3808_v23  ;;  %v1535_v25 = vadd.f32 %v1456_v1, %v1308_v26  ;;  %v1537_v1 = vadd.f32 %v1466_v6, %v1310_v28  ;;  %v1540_v46 = vadd.f32 %v2999_v11, %v1313_v42  ;;  %v1539_v11 = vadd.f32 %v3782_v15, %v1312_v20 }
 0x13e   : > { %3959 = vst [vmem:[#allocation16_spill] sm:$0xff] %v3806_v57  ;;  %v3814_v56 = vpop.f32.mrf.mxu0  ;;  %v1084_v57 = vadd.f32 %v2944_v16, %v3691_v34 }
 0x13f   : > { %v3812_v12 = vpop.f32.mrf.mxu1  ;;  %3961 = vst [vmem:[#allocation18_spill] sm:$0xff] %v3814_v56  ;;  %v1536_v56 = vadd.f32 %v2993_v63, %v1309_v14  ;;  %v1765_v18 = vadd.f32 %v1686_v3, %v1535_v25  ;;  %v1767_v6 = vadd.f32 %v3778_v9, %v1537_v1  ;;  %v1094_v25 = vadd.f32 %v3762_v52, %v3711_v13 }
 0x140   : > { %v3819_v61 = vpop.f32.mrf.mxu0  ;;  %v1311_v34 = vadd.f32 %v3724_v29, %v1084_v57  ;;  %v1087_v29 = vadd.f32 %v3742_v39, %v3701_v54  ;;  %v1090_v57 = vadd.f32 %v3746_v41, %v3703_v58  ;;  %v1315_v58 = vadd.f32 %v3740_v37, %v1088_v32 }
 0x141   : > { %v3817_v53 = vpop.f32.mrf.mxu1  ;;  %3962 = vst [vmem:[#allocation19_spill] sm:$0xff] %v3819_v61  ;;  %v1766_v14 = vadd.f32 %v3019_v0, %v1536_v56  ;;  %v1089_v0 = vadd.f32 %v3750_v44, %v3705_v62  ;;  %v1092_v37 = vadd.f32 %v3754_v47, %v3707_v2  ;;  %v1093_v2 = vadd.f32 %v3766_v55, %v3713_v19  ;;  %v3963_v19 = vld [vmem:[#allocation12_spill] sm:$0xff] }
 0x142   : > { %v3825_v23 = vpop.f32.mrf.mxu0  ;;  %v1538_v31 = vadd.f32 %v2996_v4, %v1311_v34  ;;  %v1314_v41 = vadd.f32 %v3744_v40, %v1087_v29  ;;  %v1317_v56 = vadd.f32 %v3748_v43, %v1090_v57  ;;  %v1091_v40 = vadd.f32 %v3758_v49, %v3709_v7 }
 0x143   : > { %v3823_v60 = vpop.f32.mrf.mxu1  ;;  %v1770_v43 = vadd.f32 %v3780_v8, %v1540_v46  ;;  %v1542_v7 = vadd.f32 %v3786_v10, %v1315_v58  ;;  %v1769_v28 = vadd.f32 %v3784_v17, %v1539_v11  ;;  %v1316_v42 = vadd.f32 %v3752_v45, %v1089_v0 }
 0x144   : > { %v3834_v61 = vpop.f32.mrf.mxu0  ;;  %v1768_v54 = vadd.f32 %v3022_v5, %v1538_v31  ;;  %v1541_v47 = vadd.f32 %v3790_v22, %v1314_v41  ;;  %v1319_v13 = vadd.f32 %v3756_v48, %v1092_v37  ;;  %v1318_v52 = vadd.f32 %v3760_v51, %v1091_v40  ;;  %v3967_v48 = vld [vmem:[#allocation11_spill] sm:$0xff]  ;;  %v3969_v41 = vld [vmem:[#allocation14_spill] sm:$0xff] }
 0x145   : > { %v3832_v27 = vpop.f32.mrf.mxu1  ;;  %v1544_v55 = vadd.f32 %v3963_v19, %v1317_v56  ;;  %v1543_v56 = vadd.f32 %v3969_v41, %v1316_v42  ;;  %v3970_v0 = vld [vmem:[#allocation16_spill] sm:$0xff] }
 0x146   : > { %v3839_v21 = vpop.f32.mrf.mxu0  ;;  %v1771_v46 = vadd.f32 %v3967_v48, %v1541_v47 }
 0x147   : > { %v3837_v16 = vpop.f32.mrf.mxu1 }
 0x148   : > { %v3071_v63 = vpop.f32.mrf.mxu0 }
 0x149   : > { %v3045_v59 = vpop.f32.mrf.mxu1 }
 0x14a   : > { %v1993_v26 = vadd.f32 %v3045_v59, %v1766_v14  ;;  %v2140_v50 = vpop.f32.mrf.mxu0  ;;  %v3964_v59 = vld [vmem:[#allocation4_spill] sm:$0xff] }
 0x14b   : > { %v1913_v33 = vpop.f32.mrf.mxu1 }
 0x14c   : > { %v2220_v36 = vadd.f32 %v3071_v63, %v1993_v26  ;;  %v1992_v39 = vadd.f32 %v1913_v33, %v1765_v18  ;;  %v3074_v4 = vpop.f32.mrf.mxu0  ;;  %v1321_v63 = vadd.f32 %v3964_v59, %v1094_v25  ;;  %v3965_v18 = vld [vmem:[#allocation5_spill] sm:$0xff]  ;;  %v3966_v26 = vld [vmem:[#allocation10_spill] sm:$0xff] }
 0x14d   : > { %v3048_v3 = vpop.f32.mrf.mxu1  ;;  %v1320_v1 = vadd.f32 %v3965_v18, %v1093_v2  ;;  %v1772_v45 = vadd.f32 %v3966_v26, %v1542_v7 }
 0x14e   : > { %2236 = vst [vmem:[%s3854_s28 + $0x8] sm:$0xff] %v2220_v36  ;;  %v2219_v35 = vadd.f32 %v2140_v50, %v1992_v39  ;;  %v1995_v5 = vadd.f32 %v3048_v3, %v1768_v54  ;;  %v2273_v24 = vmul.f32 %v2220_v36, %v2220_v36  ;;  %v2150_v44 = vpop.f32.mrf.mxu0  ;;  %v3968_v39 = vld [vmem:[#allocation13_spill] sm:$0xff]  ;;  %v1546_v3 = vadd.f32 %v3970_v0, %v1319_v13 }
 0x14f   : > { %v1923_v62 = vpop.f32.mrf.mxu1  ;;  %v1774_v58 = vadd.f32 %v3968_v39, %v1544_v55  ;;  %v1548_v13 = vadd.f32 %v3817_v53, %v1321_v63  ;;  %v1547_v59 = vadd.f32 %v3823_v60, %v1320_v1 }
 0x150   : > { %2235 = vst [vmem:[%s3854_s28] sm:$0xff] %v2219_v35  ;;  %v2251_v30 = vadd.f32 %v2220_v36, %v2219_v35  ;;  %v2272_v9 = vmul.f32 %v2219_v35, %v2219_v35  ;;  %v2222_v34 = vadd.f32 %v3074_v4, %v1995_v5  ;;  %v1994_v15 = vadd.f32 %v1923_v62, %v1767_v6  ;;  %v3077_v8 = vpop.f32.mrf.mxu0 }
 0x151   : > { %v3051_v49 = vpop.f32.mrf.mxu1 }
 0x152   : > { %v2288_v38 = vadd.f32 %v2273_v24, %v2272_v9  ;;  %2238 = vst [vmem:[%s3854_s28 + $0x18] sm:$0xff] %v2222_v34  ;;  %v2221_v14 = vadd.f32 %v2150_v44, %v1994_v15  ;;  %v1997_v31 = vadd.f32 %v3051_v49, %v1770_v43  ;;  %v2160_v32 = vpop.f32.mrf.mxu0  ;;  %v2275_v50 = vmul.f32 %v2222_v34, %v2222_v34  ;;  %v3971_v43 = vld [vmem:[#allocation2_spill] sm:$0xff]  ;;  %v3973_v49 = vld [vmem:[#allocation3_spill] sm:$0xff] }
 0x153   : > { %v1933_v10 = vpop.f32.mrf.mxu1  ;;  %v3972_v24 = vld [vmem:[#allocation6_spill] sm:$0xff]  ;;  %v1545_v44 = vadd.f32 %v3812_v12, %v1318_v52 }
 0x154   : > { %2237 = vst [vmem:[%s3854_s28 + $0x10] sm:$0xff] %v2221_v14  ;;  %v2252_v22 = vadd.f32 %v2251_v30, %v2221_v14  ;;  %v2274_v29 = vmul.f32 %v2221_v14, %v2221_v14  ;;  %v2224_v57 = vadd.f32 %v3077_v8, %v1997_v31  ;;  %v1996_v17 = vadd.f32 %v1933_v10, %v1769_v28  ;;  %v3080_v33 = vpop.f32.mrf.mxu0  ;;  %v3974_v8 = vld [vmem:[#allocation8_spill] sm:$0xff]  ;;  %v3976_v31 = vld [vmem:[#allocation17_spill] sm:$0xff] }
 0x155   : > { %v3054_v51 = vpop.f32.mrf.mxu1  ;;  %v1096_v62 = vadd.f32 %v3972_v24, %v3971_v43  ;;  %v1095_v28 = vadd.f32 %v3974_v8, %v3973_v49  ;;  %v1776_v42 = vadd.f32 %v3976_v31, %v1546_v3 }
 0x156   : > { %v2289_v20 = vadd.f32 %v2288_v38, %v2274_v29  ;;  %2240 = vst [vmem:[%s3854_s28 + $0x28] sm:$0xff] %v2224_v57  ;;  %v2223_v54 = vadd.f32 %v2160_v32, %v1996_v17  ;;  %v2253_v36 = vadd.f32 %v2252_v22, %v2222_v34  ;;  %v1999_v4 = vadd.f32 %v3054_v51, %v1772_v45  ;;  %v2170_v11 = vpop.f32.mrf.mxu0  ;;  %v3975_v38 = vld [vmem:[#allocation15_spill] sm:$0xff]  ;;  %v3979_v51 = vld [vmem:[#allocation9_spill] sm:$0xff] }
 0x157   : > { %v1943_v6 = vpop.f32.mrf.mxu1  ;;  %v2277_v30 = vmul.f32 %v2224_v57, %v2224_v57  ;;  %v1773_v14 = vadd.f32 %v3975_v38, %v1543_v56  ;;  %v3977_v22 = vld [vmem:[#allocation7_spill] sm:$0xff] }
 0x158   : > { %2239 = vst [vmem:[%s3854_s28 + $0x20] sm:$0xff] %v2223_v54  ;;  %v2254_v35 = vadd.f32 %v2253_v36, %v2223_v54  ;;  %v2276_v5 = vmul.f32 %v2223_v54, %v2223_v54  ;;  %v2290_v37 = vadd.f32 %v2289_v20, %v2275_v50  ;;  %v1998_v40 = vadd.f32 %v1943_v6, %v1771_v46  ;;  %v3083_v15 = vpop.f32.mrf.mxu0  ;;  %v3980_v50 = vld [vmem:[#allocation19_spill] sm:$0xff] }
 0x159   : > { %v2226_v9 = vadd.f32 %v3080_v33, %v1999_v4  ;;  %v3057_v34 = vpop.f32.mrf.mxu1  ;;  %v1323_v29 = vadd.f32 %v3977_v22, %v1096_v62  ;;  %v1322_v33 = vadd.f32 %v3979_v51, %v1095_v28  ;;  %v1778_v20 = vadd.f32 %v3980_v50, %v1548_v13 }
 0x15a   : > { %v2291_v25 = vadd.f32 %v2290_v37, %v2276_v5  ;;  %v2225_v2 = vadd.f32 %v2170_v11, %v1998_v40  ;;  %v2255_v7 = vadd.f32 %v2254_v35, %v2224_v57  ;;  %v2001_v47 = vadd.f32 %v3057_v34, %v1774_v58  ;;  %v2180_v52 = vpop.f32.mrf.mxu0  ;;  %v3978_v57 = vld [vmem:[#allocation18_spill] sm:$0xff] }
 0x15b   : > { %2242 = vst [vmem:[%s3854_s28 + $0x38] sm:$0xff] %v2226_v9  ;;  %v1953_v12 = vpop.f32.mrf.mxu1  ;;  %v1775_v17 = vadd.f32 %v3978_v57, %v1545_v44  ;;  %v2279_v53 = vmul.f32 %v2226_v9, %v2226_v9  ;;  %v1550_v58 = vadd.f32 %v3832_v27, %v1323_v29  ;;  %v1777_v6 = vadd.f32 %v3825_v23, %v1547_v59 }
 0x15c   : > { %2241 = vst [vmem:[%s3854_s28 + $0x30] sm:$0xff] %v2225_v2  ;;  %v2256_v19 = vadd.f32 %v2255_v7, %v2225_v2  ;;  %v2278_v55 = vmul.f32 %v2225_v2, %v2225_v2  ;;  %v2292_v10 = vadd.f32 %v2291_v25, %v2277_v30  ;;  %v2228_v32 = vadd.f32 %v3083_v15, %v2001_v47  ;;  %v3086_v45 = vpop.f32.mrf.mxu0 }
 0x15d   : > { %v2000_v18 = vadd.f32 %v1953_v12, %v1773_v14  ;;  %v3060_v26 = vpop.f32.mrf.mxu1  ;;  %v1549_v11 = vadd.f32 %v3837_v16, %v1322_v33  ;;  %v1780_v62 = vadd.f32 %v3834_v61, %v1550_v58 }
 0x15e   : > { %v2293_v63 = vadd.f32 %v2292_v10, %v2278_v55  ;;  %2244 = vst [vmem:[%s3854_s28 + $0x48] sm:$0xff] %v2228_v32  ;;  %v2257_v48 = vadd.f32 %v2256_v19, %v2226_v9  ;;  %v2003_v46 = vadd.f32 %v3060_v26, %v1776_v42  ;;  %v2190_v39 = vpop.f32.mrf.mxu0  ;;  %v2281_v37 = vmul.f32 %v2228_v32, %v2228_v32 }
 0x15f   : > { %v2227_v54 = vadd.f32 %v2180_v52, %v2000_v18  ;;  %v1963_v36 = vpop.f32.mrf.mxu1  ;;  %v1779_v25 = vadd.f32 %v3839_v21, %v1549_v11 }
 0x160   : > { %v2294_v60 = vadd.f32 %v2293_v63, %v2279_v53  ;;  %v2230_v1 = vadd.f32 %v3086_v45, %v2003_v46  ;;  %v2002_v41 = vadd.f32 %v1963_v36, %v1775_v17  ;;  %v3089_v4 = vpop.f32.mrf.mxu0 }
 0x161   : > { %2243 = vst [vmem:[%s3854_s28 + $0x40] sm:$0xff] %v2227_v54  ;;  %v2258_v56 = vadd.f32 %v2257_v48, %v2227_v54  ;;  %v2280_v0 = vmul.f32 %v2227_v54, %v2227_v54  ;;  %v3063_v3 = vpop.f32.mrf.mxu1 }
 0x162   : > { %2246 = vst [vmem:[%s3854_s28 + $0x58] sm:$0xff] %v2230_v1  ;;  %v2229_v35 = vadd.f32 %v2190_v39, %v2002_v41  ;;  %v2005_v5 = vadd.f32 %v3063_v3, %v1778_v20  ;;  %v2200_v24 = vpop.f32.mrf.mxu0  ;;  %v2283_v47 = vmul.f32 %v2230_v1, %v2230_v1 }
 0x163   : > { %v2295_v40 = vadd.f32 %v2294_v60, %v2280_v0  ;;  %v2259_v27 = vadd.f32 %v2258_v56, %v2228_v32  ;;  %v1973_v43 = vpop.f32.mrf.mxu1 }
 0x164   : > { %2245 = vst [vmem:[%s3854_s28 + $0x50] sm:$0xff] %v2229_v35  ;;  %v2282_v44 = vmul.f32 %v2229_v35, %v2229_v35  ;;  %v2232_v30 = vadd.f32 %v3089_v4, %v2005_v5  ;;  %v2004_v9 = vadd.f32 %v1973_v43, %v1777_v6  ;;  %v3092_v16 = vpop.f32.mrf.mxu0 }
 0x165   : > { %v2260_v34 = vadd.f32 %v2259_v27, %v2229_v35  ;;  %v2296_v23 = vadd.f32 %v2295_v40, %v2281_v37  ;;  %v3066_v15 = vpop.f32.mrf.mxu1 }
 0x166   : > { %2248 = vst [vmem:[%s3854_s28 + $0x68] sm:$0xff] %v2232_v30  ;;  %v2231_v2 = vadd.f32 %v2200_v24, %v2004_v9  ;;  %v2007_v7 = vadd.f32 %v3066_v15, %v1780_v62  ;;  %v2210_v13 = vpop.f32.mrf.mxu0  ;;  %v2285_v52 = vmul.f32 %v2232_v30, %v2232_v30 }
 0x167   : > { %v2297_v49 = vadd.f32 %v2296_v23, %v2282_v44  ;;  %v2261_v8 = vadd.f32 %v2260_v34, %v2230_v1  ;;  %v1983_v61 = vpop.f32.mrf.mxu1 }
 0x168   : > { %2247 = vst [vmem:[%s3854_s28 + $0x60] sm:$0xff] %v2231_v2  ;;  %v2284_v28 = vmul.f32 %v2231_v2, %v2231_v2  ;;  %v2234_v38 = vadd.f32 %v3092_v16, %v2007_v7  ;;  %v2006_v14 = vadd.f32 %v1983_v61, %v1779_v25 }
 0x169   : > { %v2262_v31 = vadd.f32 %v2261_v8, %v2231_v2  ;;  %v2298_v42 = vadd.f32 %v2297_v49, %v2283_v47 }
 0x16a   : > { %2250 = vst [vmem:[%s3854_s28 + $0x78] sm:$0xff] %v2234_v38  ;;  %v2233_v12 = vadd.f32 %v2210_v13, %v2006_v14  ;;  %v2287_v22 = vmul.f32 %v2234_v38, %v2234_v38 }
 0x16b   : > { %v2299_v21 = vadd.f32 %v2298_v42, %v2284_v28  ;;  %v2263_v19 = vadd.f32 %v2262_v31, %v2232_v30 }
 0x16c   : > { %2249 = vst [vmem:[%s3854_s28 + $0x70] sm:$0xff] %v2233_v12  ;;  %v2286_v55 = vmul.f32 %v2233_v12, %v2233_v12 }
 0x16d   : > { %v2264_v10 = vadd.f32 %v2263_v19, %v2233_v12  ;;  %v2300_v32 = vadd.f32 %v2299_v21, %v2285_v52 }
 0x16f   : > { %v2265_v29 = vadd.f32 %v2264_v10, %v2234_v38  ;;  %v2301_v57 = vadd.f32 %v2300_v32, %v2286_v55 }
 0x171   : > { %v2266_v17 = vrot.slane %v2265_v29, 4  ;;  %v2302_v59 = vadd.f32 %v2301_v57, %v2287_v22 }
 0x173   : > { %v2267_v18 = vadd.f32 %v2266_v17, %v2265_v29  ;;  %v2303_v26 = vrot.slane %v2302_v59, 4 }
 0x175   : > { %v2268_v45 = vrot.slane %v2267_v18, 2  ;;  %v2304_v53 = vadd.f32 %v2303_v26, %v2302_v59 }
 0x177   : > { %v2269_v63 = vadd.f32 %v2268_v45, %v2267_v18  ;;  %v2305_v48 = vrot.slane %v2304_v53, 2 }
 0x179   : > { %v2270_v46 = vrot.slane %v2269_v63, 1  ;;  %v2306_v51 = vadd.f32 %v2305_v48, %v2304_v53 }
 0x17b   : > { %v2307_v33 = vrot.slane %v2306_v51, 1  ;;  %v2271_v50 = vadd.f32 %v2270_v46, %v2269_v63 }
 0x17d   : > { %v2308_v20 = vadd.f32 %v2307_v33, %v2306_v51 }
 0x17f   : > { %v2310_v54 = vsel %vm2309_vm1, %v2271_v50, %v2308_v20 }
 0x180   : > { %v2312_v36 = vsel %vm2311_vm2, %v2310_v54, 0.0 }
 0x181   : > { %2313 = vst [vmem:[%s212_s5] sm:$0xff] %v2312_v36 }
 0x182 PF: > { %s14_s16 = sadd.s32 1, %s3174_s16   ;;  %s3981_s12 = smov %s3166_s14 }
 0x183   : > { %p11_p8 = scmp.ge.s32.totalorder %s14_s16, 6   ;;  %s3982_s13 = smov %s3170_s15 }
 0x184   : > { %s3983_s14 = smov %s3986_s17  ;;  %s3984_s15 = smov %s3990_s18 }
 0x185   :  { %13 = sbr.rel (!%p11_p8) target bundleno = 3 (0x3), region = 81 }

</bundles_post_ra>
